<compile_context>
chip_gen: v6e
topology: v6e:2x2x1
jax: 0.10.0
libtpu: 0.0.40
codegen_flags: <defaults>
</compile_context>

<pallas_src>
import functools

import jax
import jax.numpy as jnp
from jax.experimental import pallas as pl
from jax.experimental.pallas import tpu as pltpu


# ----------------------------------------------------------------------------
# Pre-pass: Q projection + sigmoid, and exp_a = exp(-alpha*log2(n)*distances).
# Tiled over the B*Sq row dimension so it never blows VMEM.
# ----------------------------------------------------------------------------
def _aafm_prepass_kernel(q_ref, dist_ref, wq_ref, bq_ref, alpha_ref,
                         qsig_ref, expa_ref, *, n_k):
    qp = jnp.dot(q_ref[...], wq_ref[...],
                 preferred_element_type=jnp.float32) + bq_ref[...]
    qsig_ref[...] = jax.nn.sigmoid(qp).astype(qsig_ref.dtype)

    # adaptation_bias = -alpha * log2(n_k) * distances   (scalar hoisted, SMEM)
    coef = -alpha_ref[0, 0] * jnp.log2(jnp.float32(n_k))
    # exp computed in f32; cast only at the store.
    expa_ref[...] = jnp.exp(coef * dist_ref[...]).astype(expa_ref.dtype)


# ----------------------------------------------------------------------------
# Main kernel: one grid step handles P_TILE kv-batches p and ALL query batches
# j at once.  K/V projection + exp are fused here; weights are VMEM-resident.
# ----------------------------------------------------------------------------
def _aafm_main_kernel(expa_ref, qsig_ref, k_ref, v_ref,
                      wk_ref, bk_ref, wv_ref, bv_ref, out_ref,
                      *, seq_len_q):
    p_tile, n_k, d = k_ref.shape

    # Fused K/V projection for the whole p-tile: [P*Sk, D] @ [D, D] on the MXU.
    k_flat = k_ref[...].reshape(p_tile * n_k, d)
    v_flat = v_ref[...].reshape(p_tile * n_k, d)
    kp = jnp.dot(k_flat, wk_ref[...], preferred_element_type=jnp.float32) + bk_ref[...]
    vp = jnp.dot(v_flat, wv_ref[...], preferred_element_type=jnp.float32) + bv_ref[...]
    ek = jnp.exp(kp)                                    # f32  [P*Sk, D]
    ekv = ek * vp                                       # f32  [P*Sk, D]
    ekv_op = ekv.astype(expa_ref.dtype)                 # MXU operand dtype

    exp_a = expa_ref[...]                               # [B*Sq, Sk] (resident)
    exp_a_f32 = exp_a.astype(jnp.float32)
    q_sig = qsig_ref[...].astype(jnp.float32)           # [B*Sq, D]  (resident)

    # Unrolled static loop over the p slices of this tile.
    for pp in range(p_tile):
        lo = pp * n_k
        ek_p = ek[lo:lo + n_k, :]                       # [Sk, D] f32
        ekv_p = ekv_op[lo:lo + n_k, :]                  # [Sk, D] operand dtype

        # numerator[p, j, i, :] for all (j, i): one MXU matmul.
        num = jnp.dot(exp_a, ekv_p,
                      preferred_element_type=jnp.float32)          # [B*Sq, D]

        # denominator[p, j, i] = sum_s exp_a[j, i, s] * exp_k[p, j, s]
        # (valid because Sk == D and B == Sk): row j of exp_k[p] broadcast
        # across the Sq query rows of batch j, then a lane reduction.
        kb = jnp.broadcast_to(ek_p[:, None, :],
                              (n_k, seq_len_q, d)).reshape(n_k * seq_len_q, d)
        den = jnp.sum(exp_a_f32 * kb, axis=-1, keepdims=True)      # [B*Sq, 1]

        inv = pl.reciprocal(den + 1e-9, approx=True)                # EUP, ~free
        out_ref[pp] = ((q_sig * num) * inv).astype(out_ref.dtype)


# ----------------------------------------------------------------------------
# Tiling heuristics.
# ----------------------------------------------------------------------------
def _pick_row_tile(total, cap=512):
    """Largest row tile <= cap that divides `total` and is a multiple of 8."""
    if total <= cap:
        return total
    for t in range(cap - cap % 8, 0, -8):
        if total % t == 0:
            return t
    return total


def _pick_p_tile(batch, slab_bytes, resident_bytes, budget=12 * 1024 * 1024):
    """Largest p-tile (<=4, divides batch) whose double-buffered output slab +
    resident exp_a/q_sig fits a conservative cross-chip VMEM budget."""
    for t in (4, 2):
        if batch % t == 0 and 2 * t * slab_bytes + resident_bytes <= budget:
            return t
    return 1


# ----------------------------------------------------------------------------
# Wrapper.
# ----------------------------------------------------------------------------
@functools.partial(jax.jit, static_argnames=("operand_dtype", "out_dtype"))
def aafm_pallas(q, k, v, distances, wq, bq, wk, bk, wv, bv, alpha,
                *, operand_dtype=jnp.bfloat16, out_dtype=jnp.bfloat16):
    B, Sq, D = q.shape
    Sk = k.shape[1]
    # Constraints implied by the literal torch.matmul broadcasting in AAFM.forward:
    assert Sk == D, "torch code requires seq_len_k == d_model (denominator matmul)"
    if B > 1:
        assert B == Sk, "torch batch broadcast requires batch == seq_len_k for B > 1"
    else:
        # TODO(synk): B == 1 with Sk > 1 follows a different torch broadcast
        # path (output [1, Sk, Sq, D]); not implemented.
        assert Sk == 1, "B == 1 path only implemented for Sk == 1"
    # TODO(synk): distances=None (zero adaptation bias) path not implemented.

    f32 = jnp.float32
    q_flat = q.reshape(B * Sq, D).astype(f32)
    dist_flat = distances.reshape(B * Sq, Sk).astype(f32)
    k3 = k.astype(f32)
    v3 = v.astype(f32)
    wq, wk, wv = wq.astype(f32), wk.astype(f32), wv.astype(f32)
    bq2, bk2, bv2 = bq.reshape(1, D).astype(f32), bk.reshape(1, D).astype(f32), bv.reshape(1, D).astype(f32)
    alpha2 = alpha.reshape(1, 1).astype(f32)

    rows = B * Sq
    rt = _pick_row_tile(rows)
    nrb = rows // rt

    # ---- Pre-pass: Q-side only (projection + sigmoid, exp_a), row-tiled. ----
    qsig_flat, expa_flat = pl.pallas_call(
        functools.partial(_aafm_prepass_kernel, n_k=Sk),
        grid=(nrb,),
        in_specs=[
            pl.BlockSpec((rt, D), lambda r: (r, 0)),                 # q rows
            pl.BlockSpec((rt, Sk), lambda r: (r, 0)),                # distance rows
            pl.BlockSpec((D, D), lambda r: (0, 0)),                  # Wq (resident)
            pl.BlockSpec((1, D), lambda r: (0, 0)),                  # bq (resident)
            pl.BlockSpec(memory_space=pltpu.MemorySpace.SMEM),       # alpha scalar
        ],
        out_specs=(
            pl.BlockSpec((rt, D), lambda r: (r, 0)),
            pl.BlockSpec((rt, Sk), lambda r: (r, 0)),
        ),
        out_shape=(
            jax.ShapeDtypeStruct((rows, D), operand_dtype),          # sigmoid(Q_proj)
            jax.ShapeDtypeStruct((rows, Sk), operand_dtype),         # exp_a
        ),
        compiler_params=pltpu.CompilerParams(
            dimension_semantics=("parallel",)),
    )(q_flat, dist_flat, wq, bq2, alpha2)

    # ---- Main kernel: grid over p-tiles, all query batches per step. ----
    op_bytes = jnp.dtype(operand_dtype).itemsize
    out_bytes = jnp.dtype(out_dtype).itemsize
    slab_bytes = rows * D * out_bytes                    # one p's output slab
    resident_bytes = 2 * rows * (D + Sk) * op_bytes      # exp_a + q_sig (x2 buffers)
    p_tile = _pick_p_tile(B, slab_bytes, resident_bytes)

    out_slab = pl.pallas_call(
        functools.partial(_aafm_main_kernel, seq_len_q=Sq),
        grid=(B // p_tile,),
        in_specs=[
            pl.BlockSpec((rows, Sk), lambda p: (0, 0)),              # exp_a (grid-invariant)
            pl.BlockSpec((rows, D), lambda p: (0, 0)),               # sigmoid(Q) (grid-invariant)
            pl.BlockSpec((p_tile, Sk, D), lambda p: (p, 0, 0)),      # raw K tile
            pl.BlockSpec((p_tile, Sk, D), lambda p: (p, 0, 0)),      # raw V tile
            pl.BlockSpec((D, D), lambda p: (0, 0)),                  # Wk (resident)
            pl.BlockSpec((1, D), lambda p: (0, 0)),                  # bk
            pl.BlockSpec((D, D), lambda p: (0, 0)),                  # Wv
            pl.BlockSpec((1, D), lambda p: (0, 0)),                  # bv
        ],
        out_specs=pl.BlockSpec((p_tile, rows, D), lambda p: (p, 0, 0)),
        out_shape=jax.ShapeDtypeStruct((B, rows, D), out_dtype),
        compiler_params=pltpu.CompilerParams(
            dimension_semantics=("parallel",)),          # v7x: shard p-tiles over 2 TCs
    )(expa_flat, qsig_flat, k3, v3, wk, bk2, wv, bv2)

    # [B, B*Sq, D] and [B, B, Sq, D] share the same row-major order — free reshape.
    return out_slab.reshape(B, B, Sq, D)


# ----------------------------------------------------------------------------
# Pure-JAX reference (line-by-line port of the torch forward, same broadcasting).
# ----------------------------------------------------------------------------
def aafm_reference(q, k, v, distances, wq, bq, wk, bk, wv, bv, alpha):
    qp = q @ wq + bq
    kp = k @ wk + bk
    vp = v @ wv + bv
    q_sig = jax.nn.sigmoid(qp)
    n = k.shape[1]
    bias = -alpha * jnp.log2(jnp.float32(n)) * distances            # [B, Sq, Sk]
    exp_k = jnp.exp(kp)                                             # [B, Sk, D]
    exp_a = jnp.exp(bias)                                           # [B, Sq, Sk]
    weighted = exp_k[:, None] * vp[:, None]                         # [B, 1, Sk, D]
    numerator = jnp.matmul(exp_a, weighted)                         # [B, B, Sq, D]
    denominator = jnp.matmul(exp_a, exp_k[..., None])               # [B, B, Sq, 1]
    attention = numerator / (denominator + 1e-9)
    return q_sig * attention                                        # [B, B, Sq, D]


if __name__ == "__main__":
    # Small shapes consistent with the forward's broadcasting constraints:
    # batch == seq_len_k == d_model.
    B, Sq, Sk, D = 8, 16, 8, 8

    key = jax.random.PRNGKey(0)
    ks = jax.random.split(key, 10)
    q = 0.5 * jax.random.normal(ks[0], (B, Sq, D), jnp.float32)
    k = 0.5 * jax.random.normal(ks[1], (B, Sk, D), jnp.float32)
    v = 0.5 * jax.random.normal(ks[2], (B, Sk, D), jnp.float32)
    distances = jnp.abs(jax.random.normal(ks[3], (B, Sq, Sk), jnp.float32))

    # Synthetic nn.Linear(d_model, d_model) parameters, pre-transposed so
    # proj(x) = x @ W + b.
    wq = 0.2 * jax.random.normal(ks[4], (D, D), jnp.float32)
    wk = 0.2 * jax.random.normal(ks[5], (D, D), jnp.float32)
    wv = 0.2 * jax.random.normal(ks[6], (D, D), jnp.float32)
    bq = 0.1 * jax.random.normal(ks[7], (D,), jnp.float32)
    bk = 0.1 * jax.random.normal(ks[8], (D,), jnp.float32)
    bv = 0.1 * jax.random.normal(ks[9], (D,), jnp.float32)
    alpha = jnp.ones((1,), jnp.float32)   # nn.Parameter(torch.ones(1))

    ref = aafm_reference(q, k, v, distances, wq, bq, wk, bk, wv, bv, alpha)
    assert ref.shape == (B, B, Sq, D), ref.shape

    # Full-precision path: verifies the algorithm (only approx-reciprocal noise).
    out_f32 = aafm_pallas(q, k, v, distances, wq, bq, wk, bk, wv, bv, alpha,
                          operand_dtype=jnp.float32, out_dtype=jnp.float32)
    out_f32 = jax.block_until_ready(out_f32)
    assert out_f32.shape == (B, B, Sq, D), out_f32.shape
    assert jnp.allclose(out_f32, ref, rtol=5e-3, atol=5e-3), \
        float(jnp.max(jnp.abs(out_f32 - ref)))

    # Default bf16 operand/output path (the HBM-bandwidth configuration).
    out_bf = aafm_pallas(q, k, v, distances, wq, bq, wk, bk, wv, bv, alpha)
    out_bf = jax.block_until_ready(out_bf).astype(jnp.float32)
    assert out_bf.shape == (B, B, Sq, D), out_bf.shape
    assert jnp.allclose(out_bf, ref, rtol=4e-2, atol=4e-2), \
        float(jnp.max(jnp.abs(out_bf - ref)))

    print("KERNEL_OK")
</pallas_src>

<mosaic_0001>
module attributes {stable_mosaic.version = 11 : i64} {
  func.func @_aafm_prepass_kernel(%arg0: i32, %arg1: memref<128x8xf32, #tpu.memory_space<vmem>>, %arg2: memref<128x8xf32, #tpu.memory_space<vmem>>, %arg3: memref<8x8xf32, #tpu.memory_space<vmem>>, %arg4: memref<1x8xf32, #tpu.memory_space<vmem>>, %arg5: memref<1x1xf32, #tpu.memory_space<smem>>, %arg6: memref<128x8xf32, #tpu.memory_space<vmem>>, %arg7: memref<128x8xf32, #tpu.memory_space<vmem>>) attributes {dimension_semantics = [#tpu.dimension_semantics<parallel>], iteration_bounds = array<i64: 1>, scalar_prefetch = 0 : i64, scratch_operands = 0 : i64, tpu.core_type = #tpu.core_type<tc>, window_params = [{transform_indices = @transform_0, window_bounds = array<i64: 128, 8>}, {transform_indices = @transform_1, window_bounds = array<i64: 128, 8>}, {pipeline_mode = #tpu.pipeline_mode<synchronous>, transform_indices = @transform_2, window_bounds = array<i64: 8, 8>}, {pipeline_mode = #tpu.pipeline_mode<synchronous>, transform_indices = @transform_3, window_bounds = array<i64: 1, 8>}, {transform_indices = @transform_4, window_bounds = array<i64: 1, 1>}, {transform_indices = @transform_5, window_bounds = array<i64: 128, 8>}, {transform_indices = @transform_6, window_bounds = array<i64: 128, 8>}]} {
    %c0 = arith.constant 0 : index
    %c0_0 = arith.constant 0 : index
    %0 = vector.load %arg1[%c0, %c0_0] : memref<128x8xf32, #tpu.memory_space<vmem>>, vector<128x8xf32>
    %c0_1 = arith.constant 0 : index
    %c0_2 = arith.constant 0 : index
    %1 = vector.load %arg3[%c0_1, %c0_2] : memref<8x8xf32, #tpu.memory_space<vmem>>, vector<8x8xf32>
    %cst = arith.constant dense<0.000000e+00> : vector<128x8xf32>
    %2 = tpu.matmul %0, %1, %cst {dimension_numbers = #tpu.dot_dimension_numbers<[1], [0], [0], [1], [0, 0, 1, 1], [], []>} : vector<128x8xf32>, vector<8x8xf32>, vector<128x8xf32> -> vector<128x8xf32>
    %c0_3 = arith.constant 0 : index
    %c0_4 = arith.constant 0 : index
    %3 = vector.load %arg4[%c0_3, %c0_4] : memref<1x8xf32, #tpu.memory_space<vmem>>, vector<1x8xf32>
    %4 = vector.broadcast %3 : vector<1x8xf32> to vector<128x8xf32>
    %5 = arith.addf %2, %4 : vector<128x8xf32>
    %6 = arith.negf %5 : vector<128x8xf32>
    %7 = math.exp %6 : vector<128x8xf32>
    %cst_5 = arith.constant 1.000000e+00 : f32
    %8 = vector.broadcast %cst_5 : f32 to vector<128x8xf32>
    %9 = arith.addf %8, %7 : vector<128x8xf32>
    %10 = arith.divf %8, %9 : vector<128x8xf32>
    %c0_6 = arith.constant 0 : index
    %c0_7 = arith.constant 0 : index
    %11 = vector.load %arg6[%c0_6, %c0_7] : memref<128x8xf32, #tpu.memory_space<vmem>>, vector<128x8xf32>
    tpu.vector_store %arg6[%c0_6, %c0_7], %10 {strides = array<i32>} : memref<128x8xf32, #tpu.memory_space<vmem>>, vector<128x8xf32>,
    %c0_8 = arith.constant 0 : index
    %c0_9 = arith.constant 0 : index
    %12 = memref.load %arg5[%c0_8, %c0_9] : memref<1x1xf32, #tpu.memory_space<smem>>
    %cst_10 = arith.constant 0.000000e+00 : f32
    %13 = arith.subf %cst_10, %12 : f32
    %cst_11 = arith.constant 8.000000e+00 : f32
    %14 = math.log %cst_11 : f32
    %cst_12 = arith.constant 2.000000e+00 : f32
    %15 = math.log %cst_12 : f32
    %16 = arith.divf %14, %15 : f32
    %17 = arith.mulf %13, %16 : f32
    %c0_13 = arith.constant 0 : index
    %c0_14 = arith.constant 0 : index
    %18 = vector.load %arg2[%c0_13, %c0_14] : memref<128x8xf32, #tpu.memory_space<vmem>>, vector<128x8xf32>
    %19 = vector.broadcast %17 : f32 to vector<128x8xf32>
    %20 = arith.mulf %19, %18 : vector<128x8xf32>
    %21 = math.exp %20 : vector<128x8xf32>
    %c0_15 = arith.constant 0 : index
    %c0_16 = arith.constant 0 : index
    %22 = vector.load %arg7[%c0_15, %c0_16] : memref<128x8xf32, #tpu.memory_space<vmem>>, vector<128x8xf32>
    tpu.vector_store %arg7[%c0_15, %c0_16], %21 {strides = array<i32>} : memref<128x8xf32, #tpu.memory_space<vmem>>, vector<128x8xf32>,
    return
  }
  func.func @transform_0(%arg0: i32) -> (i32, i32) {
    %c0_i32 = arith.constant 0 : i32
    %c0_i32_0 = arith.constant 0 : i32
    return %arg0, %c0_i32 : i32, i32
  }
  func.func @transform_1(%arg0: i32) -> (i32, i32) {
    %c0_i32 = arith.constant 0 : i32
    %c0_i32_0 = arith.constant 0 : i32
    return %arg0, %c0_i32 : i32, i32
  }
  func.func @transform_2(%arg0: i32) -> (i32, i32) {
    %c0_i32 = arith.constant 0 : i32
    %c0_i32_0 = arith.constant 0 : i32
    %c0_i32_1 = arith.constant 0 : i32
    return %c0_i32, %c0_i32_0 : i32, i32
  }
  func.func @transform_3(%arg0: i32) -> (i32, i32) {
    %c0_i32 = arith.constant 0 : i32
    %c0_i32_0 = arith.constant 0 : i32
    %c0_i32_1 = arith.constant 0 : i32
    return %c0_i32, %c0_i32_0 : i32, i32
  }
  func.func @transform_4(%arg0: i32) -> (i32, i32) {
    %c0_i32 = arith.constant 0 : i32
    %c0_i32_0 = arith.constant 0 : i32
    %c0_i32_1 = arith.constant 0 : i32
    return %c0_i32, %c0_i32_0 : i32, i32
  }
  func.func @transform_5(%arg0: i32) -> (i32, i32) {
    %c0_i32 = arith.constant 0 : i32
    %c0_i32_0 = arith.constant 0 : i32
    return %arg0, %c0_i32 : i32, i32
  }
  func.func @transform_6(%arg0: i32) -> (i32, i32) {
    %c0_i32 = arith.constant 0 : i32
    %c0_i32_0 = arith.constant 0 : i32
    return %arg0, %c0_i32 : i32, i32
  }
}

module attributes {stable_mosaic.version = 11 : i64} {
  func.func @_aafm_main_kernel(%arg0: i32, %arg1: memref<128x8xf32, #tpu.memory_space<vmem>>, %arg2: memref<128x8xf32, #tpu.memory_space<vmem>>, %arg3: memref<4x8x8xf32, #tpu.memory_space<vmem>>, %arg4: memref<4x8x8xf32, #tpu.memory_space<vmem>>, %arg5: memref<8x8xf32, #tpu.memory_space<vmem>>, %arg6: memref<1x8xf32, #tpu.memory_space<vmem>>, %arg7: memref<8x8xf32, #tpu.memory_space<vmem>>, %arg8: memref<1x8xf32, #tpu.memory_space<vmem>>, %arg9: memref<4x128x8xf32, #tpu.memory_space<vmem>>) attributes {dimension_semantics = [#tpu.dimension_semantics<parallel>], iteration_bounds = array<i64: 2>, scalar_prefetch = 0 : i64, scratch_operands = 0 : i64, tpu.core_type = #tpu.core_type<tc>, window_params = [{pipeline_mode = #tpu.pipeline_mode<synchronous>, transform_indices = @transform_0, window_bounds = array<i64: 128, 8>}, {pipeline_mode = #tpu.pipeline_mode<synchronous>, transform_indices = @transform_1, window_bounds = array<i64: 128, 8>}, {transform_indices = @transform_2, window_bounds = array<i64: 4, 8, 8>}, {transform_indices = @transform_3, window_bounds = array<i64: 4, 8, 8>}, {pipeline_mode = #tpu.pipeline_mode<synchronous>, transform_indices = @transform_4, window_bounds = array<i64: 8, 8>}, {pipeline_mode = #tpu.pipeline_mode<synchronous>, transform_indices = @transform_5, window_bounds = array<i64: 1, 8>}, {pipeline_mode = #tpu.pipeline_mode<synchronous>, transform_indices = @transform_6, window_bounds = array<i64: 8, 8>}, {pipeline_mode = #tpu.pipeline_mode<synchronous>, transform_indices = @transform_7, window_bounds = array<i64: 1, 8>}, {transform_indices = @transform_8, window_bounds = array<i64: 4, 128, 8>}]} {
    %c0 = arith.constant 0 : index
    %c0_0 = arith.constant 0 : index
    %c0_1 = arith.constant 0 : index
    %0 = vector.load %arg3[%c0, %c0_0, %c0_1] : memref<4x8x8xf32, #tpu.memory_space<vmem>>, vector<4x8x8xf32>
    %1 = vector.shape_cast %0 : vector<4x8x8xf32> to vector<32x8xf32>
    %c0_2 = arith.constant 0 : index
    %c0_3 = arith.constant 0 : index
    %c0_4 = arith.constant 0 : index
    %2 = vector.load %arg4[%c0_2, %c0_3, %c0_4] : memref<4x8x8xf32, #tpu.memory_space<vmem>>, vector<4x8x8xf32>
    %3 = vector.shape_cast %2 : vector<4x8x8xf32> to vector<32x8xf32>
    %c0_5 = arith.constant 0 : index
    %c0_6 = arith.constant 0 : index
    %4 = vector.load %arg5[%c0_5, %c0_6] : memref<8x8xf32, #tpu.memory_space<vmem>>, vector<8x8xf32>
    %cst = arith.constant dense<0.000000e+00> : vector<32x8xf32>
    %5 = tpu.matmul %1, %4, %cst {dimension_numbers = #tpu.dot_dimension_numbers<[1], [0], [0], [1], [0, 0, 1, 1], [], []>} : vector<32x8xf32>, vector<8x8xf32>, vector<32x8xf32> -> vector<32x8xf32>
    %c0_7 = arith.constant 0 : index
    %c0_8 = arith.constant 0 : index
    %6 = vector.load %arg6[%c0_7, %c0_8] : memref<1x8xf32, #tpu.memory_space<vmem>>, vector<1x8xf32>
    %7 = vector.broadcast %6 : vector<1x8xf32> to vector<32x8xf32>
    %8 = arith.addf %5, %7 : vector<32x8xf32>
    %c0_9 = arith.constant 0 : index
    %c0_10 = arith.constant 0 : index
    %9 = vector.load %arg7[%c0_9, %c0_10] : memref<8x8xf32, #tpu.memory_space<vmem>>, vector<8x8xf32>
    %cst_11 = arith.constant dense<0.000000e+00> : vector<32x8xf32>
    %10 = tpu.matmul %3, %9, %cst_11 {dimension_numbers = #tpu.dot_dimension_numbers<[1], [0], [0], [1], [0, 0, 1, 1], [], []>} : vector<32x8xf32>, vector<8x8xf32>, vector<32x8xf32> -> vector<32x8xf32>
    %c0_12 = arith.constant 0 : index
    %c0_13 = arith.constant 0 : index
    %11 = vector.load %arg8[%c0_12, %c0_13] : memref<1x8xf32, #tpu.memory_space<vmem>>, vector<1x8xf32>
    %12 = vector.broadcast %11 : vector<1x8xf32> to vector<32x8xf32>
    %13 = arith.addf %10, %12 : vector<32x8xf32>
    %14 = math.exp %8 : vector<32x8xf32>
    %15 = arith.mulf %14, %13 : vector<32x8xf32>
    %c0_14 = arith.constant 0 : index
    %c0_15 = arith.constant 0 : index
    %16 = vector.load %arg1[%c0_14, %c0_15] : memref<128x8xf32, #tpu.memory_space<vmem>>, vector<128x8xf32>
    %c0_16 = arith.constant 0 : index
    %c0_17 = arith.constant 0 : index
    %17 = vector.load %arg2[%c0_16, %c0_17] : memref<128x8xf32, #tpu.memory_space<vmem>>, vector<128x8xf32>
    %18 = vector.extract_strided_slice %14 {offsets = [0, 0], sizes = [8, 8], strides = [1, 1]} : vector<32x8xf32> to vector<8x8xf32>
    %19 = vector.extract_strided_slice %15 {offsets = [0, 0], sizes = [8, 8], strides = [1, 1]} : vector<32x8xf32> to vector<8x8xf32>
    %cst_18 = arith.constant dense<0.000000e+00> : vector<128x8xf32>
    %20 = tpu.matmul %16, %19, %cst_18 {dimension_numbers = #tpu.dot_dimension_numbers<[1], [0], [0], [1], [0, 0, 1, 1], [], []>} : vector<128x8xf32>, vector<8x8xf32>, vector<128x8xf32> -> vector<128x8xf32>
    %21 = vector.shape_cast %18 : vector<8x8xf32> to vector<8x1x8xf32>
    %22 = vector.shape_cast %21 : vector<8x1x8xf32> to vector<8x1x8xf32>
    %23 = vector.broadcast %22 : vector<8x1x8xf32> to vector<8x16x8xf32>
    %24 = vector.shape_cast %23 : vector<8x16x8xf32> to vector<128x8xf32>
    %25 = arith.mulf %16, %24 : vector<128x8xf32>
    %cst_19 = arith.constant dense<0.000000e+00> : vector<128xf32>
    %26 = vector.multi_reduction <add>, %25, %cst_19 [1] : vector<128x8xf32> to vector<128xf32>
    %27 = vector.shape_cast %26 : vector<128xf32> to vector<128x1xf32>
    %cst_20 = arith.constant 9.99999971E-10 : f32
    %28 = vector.broadcast %cst_20 : f32 to vector<128x1xf32>
    %29 = arith.addf %27, %28 : vector<128x1xf32>
    %30 = tpu.reciprocal %29 {approx = true} : vector<128x1xf32> -> vector<128x1xf32>
    %31 = arith.mulf %17, %20 : vector<128x8xf32>
    %32 = vector.broadcast %30 : vector<128x1xf32> to vector<128x8xf32>
    %33 = arith.mulf %31, %32 : vector<128x8xf32>
    %c0_21 = arith.constant 0 : index
    %c0_22 = arith.constant 0 : index
    %c0_23 = arith.constant 0 : index
    %34 = vector.load %arg9[%c0_21, %c0_22, %c0_23] : memref<4x128x8xf32, #tpu.memory_space<vmem>>, vector<1x128x8xf32>
    %35 = vector.shape_cast %34 : vector<1x128x8xf32> to vector<128x8xf32>
    %36 = vector.shape_cast %33 : vector<128x8xf32> to vector<1x128x8xf32>
    tpu.vector_store %arg9[%c0_21, %c0_22, %c0_23], %36 {strides = array<i32>} : memref<4x128x8xf32, #tpu.memory_space<vmem>>, vector<1x128x8xf32>,
    %37 = vector.extract_strided_slice %14 {offsets = [8, 0], sizes = [8, 8], strides = [1, 1]} : vector<32x8xf32> to vector<8x8xf32>
    %38 = vector.extract_strided_slice %15 {offsets = [8, 0], sizes = [8, 8], strides = [1, 1]} : vector<32x8xf32> to vector<8x8xf32>
    %cst_24 = arith.constant dense<0.000000e+00> : vector<128x8xf32>
    %39 = tpu.matmul %16, %38, %cst_24 {dimension_numbers = #tpu.dot_dimension_numbers<[1], [0], [0], [1], [0, 0, 1, 1], [], []>} : vector<128x8xf32>, vector<8x8xf32>, vector<128x8xf32> -> vector<128x8xf32>
    %40 = vector.shape_cast %37 : vector<8x8xf32> to vector<8x1x8xf32>
    %41 = vector.shape_cast %40 : vector<8x1x8xf32> to vector<8x1x8xf32>
    %42 = vector.broadcast %41 : vector<8x1x8xf32> to vector<8x16x8xf32>
    %43 = vector.shape_cast %42 : vector<8x16x8xf32> to vector<128x8xf32>
    %44 = arith.mulf %16, %43 : vector<128x8xf32>
    %cst_25 = arith.constant dense<0.000000e+00> : vector<128xf32>
    %45 = vector.multi_reduction <add>, %44, %cst_25 [1] : vector<128x8xf32> to vector<128xf32>
    %46 = vector.shape_cast %45 : vector<128xf32> to vector<128x1xf32>
    %cst_26 = arith.constant 9.99999971E-10 : f32
    %47 = vector.broadcast %cst_26 : f32 to vector<128x1xf32>
    %48 = arith.addf %46, %47 : vector<128x1xf32>
    %49 = tpu.reciprocal %48 {approx = true} : vector<128x1xf32> -> vector<128x1xf32>
    %50 = arith.mulf %17, %39 : vector<128x8xf32>
    %51 = vector.broadcast %49 : vector<128x1xf32> to vector<128x8xf32>
    %52 = arith.mulf %50, %51 : vector<128x8xf32>
    %c1 = arith.constant 1 : index
    %c0_27 = arith.constant 0 : index
    %c0_28 = arith.constant 0 : index
    %53 = vector.load %arg9[%c1, %c0_27, %c0_28] : memref<4x128x8xf32, #tpu.memory_space<vmem>>, vector<1x128x8xf32>
    %54 = vector.shape_cast %53 : vector<1x128x8xf32> to vector<128x8xf32>
    %55 = vector.shape_cast %52 : vector<128x8xf32> to vector<1x128x8xf32>
    tpu.vector_store %arg9[%c1, %c0_27, %c0_28], %55 {strides = array<i32>} : memref<4x128x8xf32, #tpu.memory_space<vmem>>, vector<1x128x8xf32>,
    %56 = vector.extract_strided_slice %14 {offsets = [16, 0], sizes = [8, 8], strides = [1, 1]} : vector<32x8xf32> to vector<8x8xf32>
    %57 = vector.extract_strided_slice %15 {offsets = [16, 0], sizes = [8, 8], strides = [1, 1]} : vector<32x8xf32> to vector<8x8xf32>
    %cst_29 = arith.constant dense<0.000000e+00> : vector<128x8xf32>
    %58 = tpu.matmul %16, %57, %cst_29 {dimension_numbers = #tpu.dot_dimension_numbers<[1], [0], [0], [1], [0, 0, 1, 1], [], []>} : vector<128x8xf32>, vector<8x8xf32>, vector<128x8xf32> -> vector<128x8xf32>
    %59 = vector.shape_cast %56 : vector<8x8xf32> to vector<8x1x8xf32>
    %60 = vector.shape_cast %59 : vector<8x1x8xf32> to vector<8x1x8xf32>
    %61 = vector.broadcast %60 : vector<8x1x8xf32> to vector<8x16x8xf32>
    %62 = vector.shape_cast %61 : vector<8x16x8xf32> to vector<128x8xf32>
    %63 = arith.mulf %16, %62 : vector<128x8xf32>
    %cst_30 = arith.constant dense<0.000000e+00> : vector<128xf32>
    %64 = vector.multi_reduction <add>, %63, %cst_30 [1] : vector<128x8xf32> to vector<128xf32>
    %65 = vector.shape_cast %64 : vector<128xf32> to vector<128x1xf32>
    %cst_31 = arith.constant 9.99999971E-10 : f32
    %66 = vector.broadcast %cst_31 : f32 to vector<128x1xf32>
    %67 = arith.addf %65, %66 : vector<128x1xf32>
    %68 = tpu.reciprocal %67 {approx = true} : vector<128x1xf32> -> vector<128x1xf32>
    %69 = arith.mulf %17, %58 : vector<128x8xf32>
    %70 = vector.broadcast %68 : vector<128x1xf32> to vector<128x8xf32>
    %71 = arith.mulf %69, %70 : vector<128x8xf32>
    %c2 = arith.constant 2 : index
    %c0_32 = arith.constant 0 : index
    %c0_33 = arith.constant 0 : index
    %72 = vector.load %arg9[%c2, %c0_32, %c0_33] : memref<4x128x8xf32, #tpu.memory_space<vmem>>, vector<1x128x8xf32>
    %73 = vector.shape_cast %72 : vector<1x128x8xf32> to vector<128x8xf32>
    %74 = vector.shape_cast %71 : vector<128x8xf32> to vector<1x128x8xf32>
    tpu.vector_store %arg9[%c2, %c0_32, %c0_33], %74 {strides = array<i32>} : memref<4x128x8xf32, #tpu.memory_space<vmem>>, vector<1x128x8xf32>,
    %75 = vector.extract_strided_slice %14 {offsets = [24, 0], sizes = [8, 8], strides = [1, 1]} : vector<32x8xf32> to vector<8x8xf32>
    %76 = vector.extract_strided_slice %15 {offsets = [24, 0], sizes = [8, 8], strides = [1, 1]} : vector<32x8xf32> to vector<8x8xf32>
    %cst_34 = arith.constant dense<0.000000e+00> : vector<128x8xf32>
    %77 = tpu.matmul %16, %76, %cst_34 {dimension_numbers = #tpu.dot_dimension_numbers<[1], [0], [0], [1], [0, 0, 1, 1], [], []>} : vector<128x8xf32>, vector<8x8xf32>, vector<128x8xf32> -> vector<128x8xf32>
    %78 = vector.shape_cast %75 : vector<8x8xf32> to vector<8x1x8xf32>
    %79 = vector.shape_cast %78 : vector<8x1x8xf32> to vector<8x1x8xf32>
    %80 = vector.broadcast %79 : vector<8x1x8xf32> to vector<8x16x8xf32>
    %81 = vector.shape_cast %80 : vector<8x16x8xf32> to vector<128x8xf32>
    %82 = arith.mulf %16, %81 : vector<128x8xf32>
    %cst_35 = arith.constant dense<0.000000e+00> : vector<128xf32>
    %83 = vector.multi_reduction <add>, %82, %cst_35 [1] : vector<128x8xf32> to vector<128xf32>
    %84 = vector.shape_cast %83 : vector<128xf32> to vector<128x1xf32>
    %cst_36 = arith.constant 9.99999971E-10 : f32
    %85 = vector.broadcast %cst_36 : f32 to vector<128x1xf32>
    %86 = arith.addf %84, %85 : vector<128x1xf32>
    %87 = tpu.reciprocal %86 {approx = true} : vector<128x1xf32> -> vector<128x1xf32>
    %88 = arith.mulf %17, %77 : vector<128x8xf32>
    %89 = vector.broadcast %87 : vector<128x1xf32> to vector<128x8xf32>
    %90 = arith.mulf %88, %89 : vector<128x8xf32>
    %c3 = arith.constant 3 : index
    %c0_37 = arith.constant 0 : index
    %c0_38 = arith.constant 0 : index
    %91 = vector.load %arg9[%c3, %c0_37, %c0_38] : memref<4x128x8xf32, #tpu.memory_space<vmem>>, vector<1x128x8xf32>
    %92 = vector.shape_cast %91 : vector<1x128x8xf32> to vector<128x8xf32>
    %93 = vector.shape_cast %90 : vector<128x8xf32> to vector<1x128x8xf32>
    tpu.vector_store %arg9[%c3, %c0_37, %c0_38], %93 {strides = array<i32>} : memref<4x128x8xf32, #tpu.memory_space<vmem>>, vector<1x128x8xf32>,
    return
  }
  func.func @transform_0(%arg0: i32) -> (i32, i32) {
    %c0_i32 = arith.constant 0 : i32
    %c0_i32_0 = arith.constant 0 : i32
    %c0_i32_1 = arith.constant 0 : i32
    return %c0_i32, %c0_i32_0 : i32, i32
  }
  func.func @transform_1(%arg0: i32) -> (i32, i32) {
    %c0_i32 = arith.constant 0 : i32
    %c0_i32_0 = arith.constant 0 : i32
    %c0_i32_1 = arith.constant 0 : i32
    return %c0_i32, %c0_i32_0 : i32, i32
  }
  func.func @transform_2(%arg0: i32) -> (i32, i32, i32) {
    %c0_i32 = arith.constant 0 : i32
    %c0_i32_0 = arith.constant 0 : i32
    %c0_i32_1 = arith.constant 0 : i32
    return %arg0, %c0_i32, %c0_i32_0 : i32, i32, i32
  }
  func.func @transform_3(%arg0: i32) -> (i32, i32, i32) {
    %c0_i32 = arith.constant 0 : i32
    %c0_i32_0 = arith.constant 0 : i32
    %c0_i32_1 = arith.constant 0 : i32
    return %arg0, %c0_i32, %c0_i32_0 : i32, i32, i32
  }
  func.func @transform_4(%arg0: i32) -> (i32, i32) {
    %c0_i32 = arith.constant 0 : i32
    %c0_i32_0 = arith.constant 0 : i32
    %c0_i32_1 = arith.constant 0 : i32
    return %c0_i32, %c0_i32_0 : i32, i32
  }
  func.func @transform_5(%arg0: i32) -> (i32, i32) {
    %c0_i32 = arith.constant 0 : i32
    %c0_i32_0 = arith.constant 0 : i32
    %c0_i32_1 = arith.constant 0 : i32
    return %c0_i32, %c0_i32_0 : i32, i32
  }
  func.func @transform_6(%arg0: i32) -> (i32, i32) {
    %c0_i32 = arith.constant 0 : i32
    %c0_i32_0 = arith.constant 0 : i32
    %c0_i32_1 = arith.constant 0 : i32
    return %c0_i32, %c0_i32_0 : i32, i32
  }
  func.func @transform_7(%arg0: i32) -> (i32, i32) {
    %c0_i32 = arith.constant 0 : i32
    %c0_i32_0 = arith.constant 0 : i32
    %c0_i32_1 = arith.constant 0 : i32
    return %c0_i32, %c0_i32_0 : i32, i32
  }
  func.func @transform_8(%arg0: i32) -> (i32, i32, i32) {
    %c0_i32 = arith.constant 0 : i32
    %c0_i32_0 = arith.constant 0 : i32
    %c0_i32_1 = arith.constant 0 : i32
    return %arg0, %c0_i32, %c0_i32_0 : i32, i32, i32
  }
}

</mosaic_0001>

<bundles_post_ra>
// kernel: aafm_pallas.2
= control target key start
LH: loop header
LB: loop body
LE: loop exit
PB: predicated region body
PF: predicated region fallthrough
CT: control target
= control target key end

     0   :  { %vm47_vm0 = vcmask 64512   ;;  %s903_s2 = inlined_call_operand.vmem [shape: f32[8,8], index: 2, kind: input, shape index: {}]   ;;  %s904_s0 = inlined_call_operand.vmem [shape: f32[128,8], index: 0, kind: input, shape index: {}]   ;;  %s905_s4 = inlined_call_operand.<no memory space> [shape: f32[1,1], index: 4, kind: input, shape index: {}]   ;;  %s906_s1 = inlined_call_operand.vmem [shape: f32[128,8], index: 1, kind: input, shape index: {}]   ;;  %s907_s6 = inlined_call_operand.vmem [shape: f32[128,8], index: 6, kind: output, shape index: {1}]   ;;  %s908_s3 = inlined_call_operand.vmem [shape: f32[1,8], index: 3, kind: input, shape index: {}]   ;;  %s909_s5 = inlined_call_operand.vmem [shape: f32[128,8], index: 5, kind: output, shape index: {0}]  }
   0x1   :  { %v39_v0 = vld [vmem:[%s903_s2] sm:$0xff]  ;;  %v24_v3 = vld [vmem:[%s904_s0 + $0x8] sm:$0xff]  ;;  %v25_v5 = vld [vmem:[%s904_s0 + $0x10] sm:$0xff]  ;;  %s354_s7 = ssub.f32 0.0, %s905_s4 }
   0x2   :  { %v23_v1 = vld [vmem:[%s904_s0] sm:$0xff]  ;;  %495 = vmatprep.subr.mxu0 %v39_v0  ;;  %521 = vmatprep.subr.mxu1 %v39_v0  ;;  %v32_v4 = vld [vmem:[%s904_s0 + $0x48] sm:$0xff]  ;;  %v33_v6 = vld [vmem:[%s904_s0 + $0x50] sm:$0xff] }
   0x3   :  { %v31_v2 = vld [vmem:[%s904_s0 + $0x40] sm:$0xff]  ;;  %496 = vmatpush3.msra.mxu0 %v39_v0  ;;  %522 = vmatpush3.msra.mxu1 %v39_v0  ;;  %v26_v7 = vld [vmem:[%s904_s0 + $0x18] sm:$0xff]  ;;  %v28_v11 = vld [vmem:[%s904_s0 + $0x28] sm:$0xff]  ;;  %s355_s8 = smul.f32 3.0, %s354_s7 }
   0x4   :  { %497 = vmatprep.mubr.msk.f32.mxu0 %vm47_vm0, %v23_v1  ;;  %509 = vmatprep.mubr.msk.f32.mxu1 %vm47_vm0, %v31_v2  ;;  %v34_v8 = vld [vmem:[%s904_s0 + $0x58] sm:$0xff]  ;;  %v27_v9 = vld [vmem:[%s904_s0 + $0x20] sm:$0xff]  ;;  %v36_v12 = vld [vmem:[%s904_s0 + $0x68] sm:$0xff] }
   0x5   :  { %498 = vmatmul.mubr.msk.f32.vlgmr.msra.gmra.mxu0 %vm47_vm0, %v24_v3  ;;  %510 = vmatmul.mubr.msk.f32.vlgmr.msra.gmra.mxu1 %vm47_vm0, %v32_v4  ;;  %v35_v10 = vld [vmem:[%s904_s0 + $0x60] sm:$0xff]  ;;  %v29_v13 = vld [vmem:[%s904_s0 + $0x30] sm:$0xff]  ;;  %v30_v15 = vld [vmem:[%s904_s0 + $0x38] sm:$0xff]  ;;  %v372_v20 = vstv %s355_s8 }
   0x6   :  { %500 = vmatprep.mubr.msk.f32.mxu0 %vm47_vm0, %v25_v5  ;;  %512 = vmatprep.mubr.msk.f32.mxu1 %vm47_vm0, %v33_v6  ;;  %v37_v14 = vld [vmem:[%s904_s0 + $0x70] sm:$0xff]  ;;  %v38_v16 = vld [vmem:[%s904_s0 + $0x78] sm:$0xff]  ;;  %v356_v17 = vld [vmem:[%s906_s1] sm:$0xff] }
   0x7   :  { %v357_v18 = vld [vmem:[%s906_s1 + $0x8] sm:$0xff]  ;;  %v358_v19 = vld [vmem:[%s906_s1 + $0x10] sm:$0xff]  ;;  %v359_v21 = vld [vmem:[%s906_s1 + $0x18] sm:$0xff]  ;;  %v373_v24 = vmul.f32 %v372_v20, %v356_v17 }
   0x8   :  { %v360_v22 = vld [vmem:[%s906_s1 + $0x20] sm:$0xff]  ;;  %v361_v23 = vld [vmem:[%s906_s1 + $0x28] sm:$0xff]  ;;  %v374_v25 = vmul.f32 %v372_v20, %v357_v18  ;;  %v362_v26 = vld [vmem:[%s906_s1 + $0x30] sm:$0xff]  ;;  %v375_v28 = vmul.f32 %v372_v20, %v358_v19  ;;  %v376_v29 = vmul.f32 %v372_v20, %v359_v21 }
   0x9   :  { %501 = vmatmul.mubr.msk.f32.gmra.mxu0 %vm47_vm0, %v26_v7  ;;  %513 = vmatmul.mubr.msk.f32.gmra.mxu1 %vm47_vm0, %v34_v8  ;;  %v363_v27 = vld [vmem:[%s906_s1 + $0x38] sm:$0xff]  ;;  %v364_v30 = vld [vmem:[%s906_s1 + $0x40] sm:$0xff]  ;;  %v377_v31 = vmul.f32 %v372_v20, %v360_v22  ;;  %v378_v32 = vmul.f32 %v372_v20, %v361_v23  ;;  %v389_v33 = vmul.f32 1.442695, %v373_v24  ;;  %v365_v34 = vld [vmem:[%s906_s1 + $0x48] sm:$0xff]  ;;  %v379_v35 = vmul.f32 %v372_v20, %v362_v26 }
   0xa   :  { %503 = vmatprep.mubr.msk.f32.mxu0 %vm47_vm0, %v27_v9  ;;  %515 = vmatprep.mubr.msk.f32.mxu1 %vm47_vm0, %v35_v10  ;;  %v391_v36 = vmul.f32 1.442695, %v374_v25  ;;  %v366_v37 = vld [vmem:[%s906_s1 + $0x50] sm:$0xff]  ;;  %v380_v38 = vmul.f32 %v372_v20, %v363_v27  ;;  %v367_v39 = vld [vmem:[%s906_s1 + $0x58] sm:$0xff]  ;;  %v381_v40 = vmul.f32 %v372_v20, %v364_v30  ;;  %v393_v41 = vmul.f32 1.442695, %v375_v28 }
   0xb   :  { %523 = vpow2.f32 %v389_v33  ;;  %v395_v42 = vmul.f32 1.442695, %v376_v29  ;;  %v368_v43 = vld [vmem:[%s906_s1 + $0x60] sm:$0xff]  ;;  %v382_v44 = vmul.f32 %v372_v20, %v365_v34  ;;  %v397_v45 = vmul.f32 1.442695, %v377_v31  ;;  %v369_v47 = vld [vmem:[%s906_s1 + $0x68] sm:$0xff] }
   0xc   :  { %525 = vpow2.f32 %v391_v36  ;;  %v399_v46 = vmul.f32 1.442695, %v378_v32  ;;  %v383_v48 = vmul.f32 %v372_v20, %v366_v37  ;;  %v401_v49 = vmul.f32 1.442695, %v379_v35  ;;  %v370_v50 = vld [vmem:[%s906_s1 + $0x70] sm:$0xff]  ;;  %v371_v53 = vld [vmem:[%s906_s1 + $0x78] sm:$0xff] }
   0xd   :  { %504 = vmatmul.mubr.msk.f32.gmra.mxu0 %vm47_vm0, %v28_v11  ;;  %516 = vmatmul.mubr.msk.f32.gmra.mxu1 %vm47_vm0, %v36_v12  ;;  %527 = vpow2.f32 %v393_v41  ;;  %v384_v51 = vmul.f32 %v372_v20, %v367_v39  ;;  %v403_v52 = vmul.f32 1.442695, %v380_v38  ;;  %v385_v54 = vmul.f32 %v372_v20, %v368_v43  ;;  %v445_v18 = vld [vmem:[%s908_s3] ss:$0 sm:$0xff] }
   0xe   :  { %506 = vmatprep.mubr.msk.f32.mxu0 %vm47_vm0, %v29_v13  ;;  %518 = vmatprep.mubr.msk.f32.mxu1 %vm47_vm0, %v37_v14  ;;  %529 = vpow2.f32 %v395_v42  ;;  %v405_v55 = vmul.f32 1.442695, %v381_v40  ;;  %v386_v56 = vmul.f32 %v372_v20, %v369_v47  ;;  %v407_v57 = vmul.f32 1.442695, %v382_v44 }
   0xf   :  { %531 = vpow2.f32 %v397_v45  ;;  %v387_v58 = vmul.f32 %v372_v20, %v370_v50  ;;  %v409_v59 = vmul.f32 1.442695, %v383_v48  ;;  %v388_v60 = vmul.f32 %v372_v20, %v371_v53 }
  0x10   :  { %533 = vpow2.f32 %v399_v46  ;;  %v411_v61 = vmul.f32 1.442695, %v384_v51  ;;  %v413_v62 = vmul.f32 1.442695, %v385_v54  ;;  %v415_v63 = vmul.f32 1.442695, %v386_v56 }
  0x11   :  { %507 = vmatmul.mubr.msk.f32.gmra.mxu0 %vm47_vm0, %v30_v15  ;;  %519 = vmatmul.mubr.msk.f32.gmra.mxu1 %vm47_vm0, %v38_v16  ;;  %535 = vpow2.f32 %v401_v49  ;;  %v417_v0 = vmul.f32 1.442695, %v387_v58  ;;  %v419_v1 = vmul.f32 1.442695, %v388_v60 }
  0x12   :  { %537 = vpow2.f32 %v403_v52 }
  0x13   :  { %539 = vpow2.f32 %v405_v55 }
  0x14   :  { %541 = vpow2.f32 %v407_v57 }
  0x15   :  { %543 = vpow2.f32 %v409_v59 }
  0x16   :  { %545 = vpow2.f32 %v411_v61 }
  0x17   :  { %547 = vpow2.f32 %v413_v62 }
  0x18   :  { %v524_v2 = vpop.eup %523  ;;  %549 = vpow2.f32 %v415_v63 }
  0x19   :  { %v526_v3 = vpop.eup %525  ;;  %421 = vst.msk [vmem:[%s907_s6] sm:$0xff] %vm47_vm0, %v524_v2  ;;  %551 = vpow2.f32 %v417_v0 }
  0x1a   :  { %422 = vst.msk [vmem:[%s907_s6 + $0x8] sm:$0xff] %vm47_vm0, %v526_v3  ;;  %v528_v4 = vpop.eup %527  ;;  %553 = vpow2.f32 %v419_v1 }
  0x1b   :  { %v530_v5 = vpop.eup %529  ;;  %423 = vst.msk [vmem:[%s907_s6 + $0x10] sm:$0xff] %vm47_vm0, %v528_v4 }
  0x1c   :  { %v532_v6 = vpop.eup %531  ;;  %424 = vst.msk [vmem:[%s907_s6 + $0x18] sm:$0xff] %vm47_vm0, %v530_v5 }
  0x1d   :  { %v534_v7 = vpop.eup %533  ;;  %425 = vst.msk [vmem:[%s907_s6 + $0x20] sm:$0xff] %vm47_vm0, %v532_v6 }
  0x1e   :  { %v536_v8 = vpop.eup %535  ;;  %426 = vst.msk [vmem:[%s907_s6 + $0x28] sm:$0xff] %vm47_vm0, %v534_v7 }
  0x1f   :  { %v538_v9 = vpop.eup %537  ;;  %427 = vst.msk [vmem:[%s907_s6 + $0x30] sm:$0xff] %vm47_vm0, %v536_v8 }
  0x20   :  { %v540_v10 = vpop.eup %539  ;;  %428 = vst.msk [vmem:[%s907_s6 + $0x38] sm:$0xff] %vm47_vm0, %v538_v9 }
  0x21   :  { %v542_v11 = vpop.eup %541  ;;  %429 = vst.msk [vmem:[%s907_s6 + $0x40] sm:$0xff] %vm47_vm0, %v540_v10 }
  0x22   :  { %v544_v12 = vpop.eup %543  ;;  %430 = vst.msk [vmem:[%s907_s6 + $0x48] sm:$0xff] %vm47_vm0, %v542_v11 }
  0x23   :  { %v546_v13 = vpop.eup %545  ;;  %431 = vst.msk [vmem:[%s907_s6 + $0x50] sm:$0xff] %vm47_vm0, %v544_v12 }
  0x24   :  { %v548_v14 = vpop.eup %547  ;;  %432 = vst.msk [vmem:[%s907_s6 + $0x58] sm:$0xff] %vm47_vm0, %v546_v13 }
  0x25   :  { %v550_v15 = vpop.eup %549  ;;  %433 = vst.msk [vmem:[%s907_s6 + $0x60] sm:$0xff] %vm47_vm0, %v548_v14 }
  0x26   :  { %v552_v16 = vpop.eup %551  ;;  %434 = vst.msk [vmem:[%s907_s6 + $0x68] sm:$0xff] %vm47_vm0, %v550_v15 }
  0x27   :  { %v554_v17 = vpop.eup %553  ;;  %435 = vst.msk [vmem:[%s907_s6 + $0x70] sm:$0xff] %vm47_vm0, %v552_v16 }
  0x28   :  { %436 = vst.msk [vmem:[%s907_s6 + $0x78] sm:$0xff] %vm47_vm0, %v554_v17 }
  0xc5   :  { %v499_v19 = vpop.f32.mrf.mxu0  ;;  %v511_v20 = vpop.f32.mrf.mxu1 }
  0xc6   :  { %v168_v21 = vadd.f32 %v499_v19, %v445_v18  ;;  %v208_v22 = vadd.f32 %v511_v20, %v445_v18 }
  0xc7   :  { %v162_v23 = vpop.f32.mrf.mxu0  ;;  %v202_v24 = vpop.f32.mrf.mxu1 }
  0xc8   :  { %v463_v25 = vmul.f32 -1.442695, %v168_v21  ;;  %v471_v26 = vmul.f32 -1.442695, %v208_v22  ;;  %v163_v27 = vadd.f32 %v445_v18, %v162_v23  ;;  %v203_v28 = vadd.f32 %v445_v18, %v202_v24 }
  0xc9   :  { %v502_v29 = vpop.f32.mrf.mxu0  ;;  %v514_v30 = vpop.f32.mrf.mxu1 }
  0xca   :  { %555 = vpow2.f32 %v463_v25  ;;  %v462_v31 = vmul.f32 -1.442695, %v163_v27  ;;  %v470_v32 = vmul.f32 -1.442695, %v203_v28  ;;  %v178_v33 = vadd.f32 %v502_v29, %v445_v18 }
  0xcb   :  { %557 = vpow2.f32 %v471_v26  ;;  %v218_v34 = vadd.f32 %v514_v30, %v445_v18  ;;  %v172_v35 = vpop.f32.mrf.mxu0  ;;  %v212_v36 = vpop.f32.mrf.mxu1 }
  0xcc   :  { %559 = vpow2.f32 %v462_v31  ;;  %v465_v37 = vmul.f32 -1.442695, %v178_v33  ;;  %v173_v38 = vadd.f32 %v445_v18, %v172_v35  ;;  %v213_v39 = vadd.f32 %v445_v18, %v212_v36 }
  0xcd   :  { %561 = vpow2.f32 %v470_v32  ;;  %v473_v40 = vmul.f32 -1.442695, %v218_v34  ;;  %v505_v41 = vpop.f32.mrf.mxu0  ;;  %v517_v42 = vpop.f32.mrf.mxu1 }
  0xce   :  { %563 = vpow2.f32 %v465_v37  ;;  %v464_v43 = vmul.f32 -1.442695, %v173_v38  ;;  %v472_v44 = vmul.f32 -1.442695, %v213_v39  ;;  %v188_v45 = vadd.f32 %v505_v41, %v445_v18 }
  0xcf   :  { %565 = vpow2.f32 %v473_v40  ;;  %v228_v46 = vadd.f32 %v517_v42, %v445_v18  ;;  %v182_v47 = vpop.f32.mrf.mxu0  ;;  %v222_v48 = vpop.f32.mrf.mxu1 }
  0xd0   :  { %567 = vpow2.f32 %v464_v43  ;;  %v467_v49 = vmul.f32 -1.442695, %v188_v45  ;;  %v183_v50 = vadd.f32 %v445_v18, %v182_v47  ;;  %v223_v51 = vadd.f32 %v445_v18, %v222_v48 }
  0xd1   :  { %569 = vpow2.f32 %v472_v44  ;;  %v475_v52 = vmul.f32 -1.442695, %v228_v46  ;;  %v508_v53 = vpop.f32.mrf.mxu0  ;;  %v520_v54 = vpop.f32.mrf.mxu1 }
  0xd2   :  { %571 = vpow2.f32 %v467_v49  ;;  %v466_v55 = vmul.f32 -1.442695, %v183_v50  ;;  %v474_v56 = vmul.f32 -1.442695, %v223_v51  ;;  %v198_v57 = vadd.f32 %v508_v53, %v445_v18 }
  0xd3   :  { %573 = vpow2.f32 %v475_v52  ;;  %v238_v58 = vadd.f32 %v520_v54, %v445_v18  ;;  %v192_v59 = vpop.f32.mrf.mxu0  ;;  %v232_v60 = vpop.f32.mrf.mxu1 }
  0xd4   :  { %575 = vpow2.f32 %v466_v55  ;;  %v469_v61 = vmul.f32 -1.442695, %v198_v57  ;;  %v193_v62 = vadd.f32 %v445_v18, %v192_v59  ;;  %v233_v63 = vadd.f32 %v445_v18, %v232_v60 }
  0xd5   :  { %577 = vpow2.f32 %v474_v56  ;;  %v477_v0 = vmul.f32 -1.442695, %v238_v58 }
  0xd6   :  { %579 = vpow2.f32 %v469_v61  ;;  %v468_v1 = vmul.f32 -1.442695, %v193_v62  ;;  %v476_v2 = vmul.f32 -1.442695, %v233_v63 }
  0xd7   :  { %v556_v3 = vpop.eup %555  ;;  %581 = vpow2.f32 %v477_v0 }
  0xd8   :  { %v558_v4 = vpop.eup %557  ;;  %v290_v5 = vadd.f32 1.0, %v556_v3  ;;  %583 = vpow2.f32 %v468_v1 }
  0xd9   :  { %v560_v6 = vpop.eup %559  ;;  %v298_v7 = vadd.f32 1.0, %v558_v4  ;;  %585 = vpow2.f32 %v476_v2 }
  0xda   :  { %v562_v8 = vpop.eup %561  ;;  %587 = vrcp.f32 %v290_v5  ;;  %v289_v9 = vadd.f32 1.0, %v560_v6 }
  0xdb   :  { %v564_v10 = vpop.eup %563  ;;  %589 = vrcp.f32 %v298_v7  ;;  %v297_v11 = vadd.f32 1.0, %v562_v8 }
  0xdc   :  { %v566_v12 = vpop.eup %565  ;;  %591 = vrcp.f32 %v289_v9  ;;  %v292_v13 = vadd.f32 1.0, %v564_v10 }
  0xdd   :  { %v568_v14 = vpop.eup %567  ;;  %593 = vrcp.f32 %v297_v11  ;;  %v300_v15 = vadd.f32 1.0, %v566_v12 }
  0xde   :  { %v570_v16 = vpop.eup %569  ;;  %595 = vrcp.f32 %v292_v13  ;;  %v291_v17 = vadd.f32 1.0, %v568_v14 }
  0xdf   :  { %v572_v18 = vpop.eup %571  ;;  %597 = vrcp.f32 %v300_v15  ;;  %v299_v19 = vadd.f32 1.0, %v570_v16 }
  0xe0   :  { %v574_v20 = vpop.eup %573  ;;  %599 = vrcp.f32 %v291_v17  ;;  %v294_v21 = vadd.f32 1.0, %v572_v18 }
  0xe1   :  { %v576_v22 = vpop.eup %575  ;;  %601 = vrcp.f32 %v299_v19  ;;  %v302_v23 = vadd.f32 1.0, %v574_v20 }
  0xe2   :  { %v578_v24 = vpop.eup %577  ;;  %603 = vrcp.f32 %v294_v21  ;;  %v293_v25 = vadd.f32 1.0, %v576_v22 }
  0xe3   :  { %v580_v26 = vpop.eup %579  ;;  %605 = vrcp.f32 %v302_v23  ;;  %v301_v27 = vadd.f32 1.0, %v578_v24 }
  0xe4   :  { %v582_v28 = vpop.eup %581  ;;  %607 = vrcp.f32 %v293_v25  ;;  %v296_v29 = vadd.f32 1.0, %v580_v26 }
  0xe5   :  { %v584_v30 = vpop.eup %583  ;;  %609 = vrcp.f32 %v301_v27  ;;  %v304_v31 = vadd.f32 1.0, %v582_v28 }
  0xe6   :  { %v586_v32 = vpop.eup %585  ;;  %611 = vrcp.f32 %v296_v29  ;;  %v295_v33 = vadd.f32 1.0, %v584_v30 }
  0xe7   :  { %v588_v34 = vpop.eup %587  ;;  %613 = vrcp.f32 %v304_v31  ;;  %v303_v35 = vadd.f32 1.0, %v586_v32 }
  0xe8   :  { %v590_v36 = vpop.eup %589  ;;  %338 = vst.msk [vmem:[%s909_s5 + $0x8] sm:$0xff] %vm47_vm0, %v588_v34  ;;  %615 = vrcp.f32 %v295_v33 }
  0xe9   :  { %v592_v37 = vpop.eup %591  ;;  %346 = vst.msk [vmem:[%s909_s5 + $0x48] sm:$0xff] %vm47_vm0, %v590_v36  ;;  %617 = vrcp.f32 %v303_v35 }
  0xea   :  { %v594_v38 = vpop.eup %593  ;;  %337 = vst.msk [vmem:[%s909_s5] sm:$0xff] %vm47_vm0, %v592_v37 }
  0xeb   :  { %v596_v39 = vpop.eup %595  ;;  %345 = vst.msk [vmem:[%s909_s5 + $0x40] sm:$0xff] %vm47_vm0, %v594_v38 }
  0xec   :  { %v598_v40 = vpop.eup %597  ;;  %340 = vst.msk [vmem:[%s909_s5 + $0x18] sm:$0xff] %vm47_vm0, %v596_v39 }
  0xed   :  { %v600_v41 = vpop.eup %599  ;;  %348 = vst.msk [vmem:[%s909_s5 + $0x58] sm:$0xff] %vm47_vm0, %v598_v40 }
  0xee   :  { %v602_v42 = vpop.eup %601  ;;  %339 = vst.msk [vmem:[%s909_s5 + $0x10] sm:$0xff] %vm47_vm0, %v600_v41 }
  0xef   :  { %v604_v43 = vpop.eup %603  ;;  %347 = vst.msk [vmem:[%s909_s5 + $0x50] sm:$0xff] %vm47_vm0, %v602_v42 }
  0xf0   :  { %v606_v44 = vpop.eup %605  ;;  %342 = vst.msk [vmem:[%s909_s5 + $0x28] sm:$0xff] %vm47_vm0, %v604_v43 }
  0xf1   :  { %v608_v45 = vpop.eup %607  ;;  %350 = vst.msk [vmem:[%s909_s5 + $0x68] sm:$0xff] %vm47_vm0, %v606_v44 }
  0xf2   :  { %v610_v46 = vpop.eup %609  ;;  %341 = vst.msk [vmem:[%s909_s5 + $0x20] sm:$0xff] %vm47_vm0, %v608_v45 }
  0xf3   :  { %v612_v47 = vpop.eup %611  ;;  %349 = vst.msk [vmem:[%s909_s5 + $0x60] sm:$0xff] %vm47_vm0, %v610_v46 }
  0xf4   :  { %v614_v48 = vpop.eup %613  ;;  %344 = vst.msk [vmem:[%s909_s5 + $0x38] sm:$0xff] %vm47_vm0, %v612_v47 }
  0xf5   :  { %v616_v49 = vpop.eup %615  ;;  %352 = vst.msk [vmem:[%s909_s5 + $0x78] sm:$0xff] %vm47_vm0, %v614_v48 }
  0xf6   :  { %v618_v50 = vpop.eup %617  ;;  %343 = vst.msk [vmem:[%s909_s5 + $0x30] sm:$0xff] %vm47_vm0, %v616_v49 }
  0xf7   :  { %351 = vst.msk [vmem:[%s909_s5 + $0x70] sm:$0xff] %vm47_vm0, %v618_v50 }

// kernel: aafm_pallas.3
= control target key start
LH: loop header
LB: loop body
LE: loop exit
PB: predicated region body
PF: predicated region fallthrough
CT: control target
= control target key end

     0   :  { %s2767_s27 = smov 0   ;;  %s3717_s0 = inlined_call_operand.vmem [shape: f32[128,8], index: 0, kind: input, shape index: {}]   ;;  %s3718_s1 = inlined_call_operand.vmem [shape: f32[128,8], index: 1, kind: input, shape index: {}]   ;;  %s3719_s2 = inlined_call_operand.vmem [shape: f32[8,8,8], index: 2, kind: input, shape index: {}]   ;;  %s3720_s3 = inlined_call_operand.vmem [shape: f32[8,8,8], index: 3, kind: input, shape index: {}]   ;;  %s3721_s4 = inlined_call_operand.vmem [shape: f32[8,8], index: 4, kind: input, shape index: {}]   ;;  %s3722_s5 = inlined_call_operand.vmem [shape: f32[1,8], index: 5, kind: input, shape index: {}]   ;;  %s3723_s6 = inlined_call_operand.vmem [shape: f32[8,8], index: 6, kind: input, shape index: {}]   ;;  %s3724_s7 = inlined_call_operand.vmem [shape: f32[1,8], index: 7, kind: input, shape index: {}]   ;;  %s3725_s8 = inlined_call_operand.vmem [shape: f32[8,128,8], index: 8, kind: output, shape index: {}]  }
   0x1 LB: > { %s2233_s28 = sadd.s32 4294967295, %s2719_s27   ;;  %p2237_p0 = scmp.ge.s32.totalorder %s2719_s27, 1  ;;  %s2719_s27 = sphi %s2767_s27, %s18_s27  }
   0x2   : > { %p274_p1 = scmp.lt.s32.totalorder %s2719_s27, 3 }
   0x4   : > { %p275_p2 = pnand %p2237_p0, %p274_p1 }
   0x5   : > { %s2238_s9 = sshll.u32 (!%p275_p2), %s2233_s28, 2 }
   0x6   : > { %278 = sbr.rel (%p275_p2) target bundleno = 523 (0x20b), region = 52  ;;  %p315_p3 = scmp.lt.s32.totalorder (!%p275_p2), %s2238_s9, 7 }
   0xb   : > { %v341_v0 = vld [vmem:[%s3721_s4] sm:$0xff]  ;;  %s3727_s9 = smov (!%p315_p3, %s2238_s9), 7  ;;  %vm349_vm0 = vcmask 64512   ;;  %v2721_v21 = vmov 1966171168   ;;  %v794_v25 = vlaneseq  ;;  %v2823_v43 = vld [vmem:[%s3717_s0 + $0x8] sm:$0xff] }
   0xc   : > { %v447_v1 = vld [vmem:[%s3723_s6] sm:$0xff]  ;;  %2448 = vmatprep.subr.mxu0 %v341_v0  ;;  %s2239_s12 = sshll.u32 %s3727_s9, 3  ;;  %v792_v22 = vunpack.c.l.s4 %v2721_v21  ;;  %v2829_v46 = vld [vmem:[%s3717_s0 + $0x10] sm:$0xff]  ;;  %v2855_v57 = vld [vmem:[%s3717_s0 + $0x18] sm:$0xff]  ;;  %s2369_s17 = sshll.u32 %s3727_s9, 7 }
   0xd   : > { %2456 = vmatprep.subr.mxu1 %v447_v1  ;;  %2449 = vmatpush3.msra.mxu0 %v341_v0  ;;  %s318_s15 = scalar_lea.vmem %s3719_s2, %s2239_s12  ;;  %s324_s18 = scalar_lea.vmem %s3720_s3, %s2239_s12  ;;  %v2801_v10 = vld [vmem:[%s3717_s0] sm:$0xff]  ;;  %v795_v29 = vshrl.u32 %v794_v25, 7 }
   0xe   : > { %2457 = vmatpush3.msra.mxu1 %v447_v1  ;;  %v333_v2 = vld [vmem:[%s318_s15] sm:$0xff]  ;;  %v334_v3 = vld [vmem:[%s318_s15 + $0x8] sm:$0xff]  ;;  %v335_v4 = vld [vmem:[%s318_s15 + $0x10] sm:$0xff]  ;;  %v793_v28 = vunpack.c.0.s8 %v792_v22  ;;  %s3401_s23 = scalar_lea.vmem %s3725_s8, %s2369_s17 }
   0xf   : > { %2450 = vmatprep.mubr.msk.f32.mxu0 %vm349_vm0, %v333_v2  ;;  %v337_v5 = vld [vmem:[%s324_s18] sm:$0xff]  ;;  %v338_v6 = vld [vmem:[%s324_s18 + $0x8] sm:$0xff]  ;;  %v339_v7 = vld [vmem:[%s324_s18 + $0x10] sm:$0xff]  ;;  %v2815_v38 = vsub.s32 0, %v795_v29 }
  0x10   : > { %2451 = vmatmul.mubr.msk.f32.vlgmr.msra.gmra.mxu0 %vm349_vm0, %v334_v3  ;;  %2458 = vmatprep.mubr.msk.f32.mxu1 %vm349_vm0, %v337_v5  ;;  %v336_v8 = vld [vmem:[%s318_s15 + $0x18] sm:$0xff]  ;;  %v2245_v11 = vld [vmem:[%s3722_s5] ss:$0 sm:$0xff]  ;;  %v2813_v33 = vsub.s32 %v793_v28, %v795_v29 }
  0x11   : > { %2459 = vmatmul.mubr.msk.f32.vlgmr.msra.gmra.mxu1 %vm349_vm0, %v338_v6  ;;  %2453 = vmatprep.mubr.msk.f32.mxu0 %vm349_vm0, %v335_v4  ;;  %v340_v9 = vld [vmem:[%s324_s18 + $0x18] sm:$0xff]  ;;  %v2250_v30 = vld [vmem:[%s3724_s7] ss:$0 sm:$0xff] }
  0x12   : > { %2461 = vmatprep.mubr.msk.f32.mxu1 %vm349_vm0, %v339_v7  ;;  %v2883_v7 = vld [vmem:[%s3717_s0 + $0x20] sm:$0xff] }
  0x14   : > { %2454 = vmatmul.mubr.msk.f32.gmra.mxu0 %vm349_vm0, %v336_v8  ;;  %v2888_v8 = vld [vmem:[%s3717_s0 + $0x28] sm:$0xff] }
  0x15   : > { %2462 = vmatmul.mubr.msk.f32.gmra.mxu1 %vm349_vm0, %v340_v9  ;;  %2466 = vmatprep.mubr.msk.f32.mxu0 %vm349_vm0, %v2801_v10 }
  0x16   : > { %2492 = vmatprep.mubr.msk.f32.mxu1 %vm349_vm0, %v2801_v10 }
  0xd0   : > { %v2452_v12 = vpop.f32.mrf.mxu0 }
  0xd1   : > { %v434_v13 = vadd.f32 %v2452_v12, %v2245_v11  ;;  %v2460_v26 = vpop.f32.mrf.mxu1 }
  0xd2   : > { %v428_v14 = vpop.f32.mrf.mxu0  ;;  %v539_v32 = vadd.f32 %v2460_v26, %v2250_v30  ;;  %v2941_v26 = vld [vmem:[%s3717_s0 + $0x40] sm:$0xff] }
  0xd3   : > { %v554_v15 = vmul.f32 1.442695, %v434_v13  ;;  %v429_v16 = vadd.f32 %v2245_v11, %v428_v14  ;;  %v533_v31 = vpop.f32.mrf.mxu1 }
  0xd4   : > { %v2455_v17 = vpop.f32.mrf.mxu0  ;;  %v534_v35 = vadd.f32 %v2250_v30, %v533_v31 }
  0xd5   : > { %2577 = vpow2.f32 %v554_v15  ;;  %v552_v18 = vmul.f32 1.442695, %v429_v16  ;;  %v444_v19 = vadd.f32 %v2455_v17, %v2245_v11  ;;  %v2463_v34 = vpop.f32.mrf.mxu1  ;;  %v2907_v16 = vld [vmem:[%s3717_s0 + $0x48] sm:$0xff]  ;;  %v2912_v17 = vld [vmem:[%s3717_s0 + $0x30] sm:$0xff] }
  0xd6   : > { %v438_v20 = vpop.f32.mrf.mxu0  ;;  %v549_v44 = vadd.f32 %v2463_v34, %v2250_v30  ;;  %v2963_v34 = vld [vmem:[%s3717_s0 + $0x50] sm:$0xff] }
  0xd7   : > { %2579 = vpow2.f32 %v552_v18  ;;  %v558_v23 = vmul.f32 1.442695, %v444_v19  ;;  %v439_v24 = vadd.f32 %v2245_v11, %v438_v20  ;;  %v543_v40 = vpop.f32.mrf.mxu1  ;;  %v2926_v20 = vld [vmem:[%s3717_s0 + $0x38] sm:$0xff] }
  0xd8   : > { %v544_v51 = vadd.f32 %v2250_v30, %v543_v40 }
  0xd9   : > { %2581 = vpow2.f32 %v558_v23  ;;  %v556_v27 = vmul.f32 1.442695, %v439_v24 }
  0xdb   : > { %2583 = vpow2.f32 %v556_v27 }
  0xe2   : > { %v2578_v36 = vpop.eup %2577 }
  0xe3   : > { %v561_v37 = vmul.f32 %v2578_v36, %v539_v32  ;;  %v1176_v39 = vrot.slane %v2578_v36, %v2813_v33  ;;  %v1169_v41 = vcombine.high %v2578_v36, %v2578_v36 }
  0xe4   : > { %v2818_v42 = vpop.eup %2579 }
  0xe5   : > { %v560_v45 = vmul.f32 %v2818_v42, %v534_v35  ;;  %2490 = vmatprep.subr.mxu1 %v561_v37  ;;  %v1192_v47 = vrot.slane %v1176_v39, %v2813_v33  ;;  %v1184_v48 = vcombine.high %v1176_v39, %v1176_v39  ;;  %v797_v49 = vrot.slane %v2818_v42, %v2813_v33 }
  0xe6   : > { %v2834_v50 = vpop.eup %2581  ;;  %2491 = vmatpush3.msra.mxu1 %v561_v37  ;;  %v2837_v52 = vrot.slane %v1169_v41, %v2813_v33  ;;  %v790_v19 = vcombine.high %v2818_v42, %v2818_v42  ;;  %v2977_v37 = vld [vmem:[%s3717_s0 + $0x58] sm:$0xff] }
  0xe7   : > { %2464 = vmatprep.subr.mxu0 %v560_v45  ;;  %2493 = vmatmul.mubr.msk.f32.vlgmr.msra.gmra.mxu1 %vm349_vm0, %v2823_v43  ;;  %v1221_v53 = vrot.slane %v1192_v47, %v2815_v38  ;;  %v2843_v54 = vrot.slane %v1184_v48, %v2813_v33  ;;  %v2846_v55 = vrot.slane %v797_v49, %v2813_v33  ;;  %v2996_v48 = vld [vmem:[%s3717_s0 + $0x60] sm:$0xff] }
  0xe8   : > { %v2848_v56 = vpop.eup %2583  ;;  %2465 = vmatpush3.msra.mxu0 %v560_v45  ;;  %2495 = vmatprep.mubr.msk.f32.mxu1 %vm349_vm0, %v2829_v46  ;;  %v1214_v58 = vcombine.high %v1192_v47, %v1192_v47  ;;  %v563_v59 = vmul.f32 %v2834_v50, %v549_v44  ;;  %v2872_v2 = vrot.slane %v2837_v52, %v2813_v33 }
  0xe9   : > { %2467 = vmatmul.mubr.msk.f32.vlgmr.msra.gmra.mxu0 %vm349_vm0, %v2823_v43  ;;  %v1259_v60 = vmul.f32 %v1221_v53, %v2823_v43  ;;  %v1258_v61 = vmul.f32 %v1221_v53, %v2801_v10  ;;  %v1225_v62 = vrot.slane %v2843_v54, %v2815_v38  ;;  %v842_v63 = vrot.slane %v2846_v55, %v2815_v38  ;;  %v3010_v53 = vld [vmem:[%s3717_s0 + $0x68] sm:$0xff] }
  0xea   : > { %2469 = vmatprep.mubr.msk.f32.mxu0 %vm349_vm0, %v2829_v46  ;;  %v1229_v0 = vrot.slane %v1214_v58, %v2815_v38  ;;  %v562_v1 = vmul.f32 %v2848_v56, %v544_v51  ;;  %2542 = vmatprep.subr.mxu1 %v563_v59  ;;  %v1237_v9 = vrot.slane %v2872_v2, %v2815_v38 }
  0xeb   : > { %2496 = vmatmul.mubr.msk.f32.gmra.mxu1 %vm349_vm0, %v2855_v57  ;;  %v1277_v3 = vsel %vm349_vm0, %v1259_v60, 0.0  ;;  %v1274_v4 = vsel %vm349_vm0, %v1258_v61, 0.0  ;;  %v1261_v5 = vmul.f32 %v1225_v62, %v2855_v57  ;;  %v879_v6 = vmul.f32 %v842_v63, %v2801_v10 }
  0xec   : > { %1278 = vadd.xlane.f32.xlu1 %v1277_v3  ;;  %1275 = vadd.xlane.f32.xlu0 %v1274_v4  ;;  %v805_v11 = vcombine.high %v797_v49, %v797_v49  ;;  %v1263_v14 = vmul.f32 %v1229_v0, %v2888_v8  ;;  %v880_v15 = vmul.f32 %v842_v63, %v2823_v43  ;;  %v3040_v3 = vld [vmem:[%s3717_s0 + $0x78] sm:$0xff] }
  0xed   : > { %2470 = vmatmul.mubr.msk.f32.gmra.mxu0 %vm349_vm0, %v2855_v57  ;;  %2498 = vmatprep.mubr.msk.f32.mxu1 %vm349_vm0, %v2883_v7  ;;  %v1283_v12 = vsel %vm349_vm0, %v1261_v5, 0.0  ;;  %v895_v13 = vsel %vm349_vm0, %v879_v6, 0.0  ;;  %v1267_v21 = vmul.f32 %v1237_v9, %v2907_v16  ;;  %v1260_v24 = vmul.f32 %v1225_v62, %v2829_v46  ;;  %v3027_v62 = vld [vmem:[%s3717_s0 + $0x70] sm:$0xff] }
  0xee   : > { %2472 = vmatprep.mubr.msk.f32.mxu0 %vm349_vm0, %v2883_v7  ;;  %2516 = vmatprep.subr.mxu0 %v562_v1  ;;  %v2915_v18 = vrot.slane %v805_v11, %v2813_v33  ;;  %v1289_v22 = vsel %vm349_vm0, %v1263_v14, 0.0  ;;  %v898_v23 = vsel %vm349_vm0, %v880_v15, 0.0  ;;  %v835_v27 = vcombine.high %v2846_v55, %v2846_v55 }
  0xef   : > { %2499 = vmatmul.mubr.msk.f32.gmra.mxu1 %vm349_vm0, %v2888_v8  ;;  %2517 = vmatpush3.msra.mxu0 %v562_v1  ;;  %v2950_v28 = vrot.slane %v790_v19, %v2813_v33  ;;  %v1262_v29 = vmul.f32 %v1229_v0, %v2883_v7  ;;  %v1301_v30 = vsel %vm349_vm0, %v1267_v21, 0.0  ;;  %v1280_v31 = vsel %vm349_vm0, %v1260_v24, 0.0 }
  0xf0   : > { %1284 = vadd.xlane.f32.xlu1 %v1283_v12  ;;  %896 = vadd.xlane.f32.xlu0 %v895_v13  ;;  %v846_v25 = vrot.slane %v2915_v18, %v2815_v38  ;;  %v850_v35 = vrot.slane %v835_v27, %v2815_v38  ;;  %v1266_v40 = vmul.f32 %v1237_v9, %v2941_v26 }
  0xf1   : > { %2473 = vmatmul.mubr.msk.f32.gmra.mxu0 %vm349_vm0, %v2888_v8  ;;  %2501 = vmatprep.mubr.msk.f32.mxu1 %vm349_vm0, %v2912_v17  ;;  %v2972_v36 = vrot.slane %v2950_v28, %v2813_v33  ;;  %v1286_v39 = vsel %vm349_vm0, %v1262_v29, 0.0  ;;  %v1185_v41 = vcombine.high %v2837_v52, %v2837_v52  ;;  %v1216_v45 = vcombine.high %v2843_v54, %v2843_v54 }
  0xf2   : > { %2475 = vmatprep.mubr.msk.f32.mxu0 %vm349_vm0, %v2912_v17  ;;  %2543 = vmatpush3.msra.mxu1 %v563_v59  ;;  %v881_v32 = vmul.f32 %v846_v25, %v2829_v46  ;;  %v882_v44 = vmul.f32 %v846_v25, %v2855_v57  ;;  %v1936_v47 = vrot.slane %v2834_v50, %v2813_v33  ;;  %v1298_v58 = vsel %vm349_vm0, %v1266_v40, 0.0 }
  0xf3   : > { %2502 = vmatmul.mubr.msk.f32.gmra.mxu1 %vm349_vm0, %v2926_v20  ;;  %v883_v49 = vmul.f32 %v850_v35, %v2883_v7  ;;  %v858_v51 = vrot.slane %v2972_v36, %v2815_v38  ;;  %v1215_v52 = vcombine.high %v2872_v2, %v2872_v2  ;;  %v884_v54 = vmul.f32 %v850_v35, %v2888_v8 }
  0xf4   : > { %1290 = vadd.xlane.f32.xlu1 %v1289_v22  ;;  %899 = vadd.xlane.f32.xlu0 %v898_v23  ;;  %v901_v42 = vsel %vm349_vm0, %v881_v32, 0.0  ;;  %v3016_v55 = vrot.slane %v1185_v41, %v2813_v33  ;;  %v904_v59 = vsel %vm349_vm0, %v882_v44, 0.0  ;;  %v1233_v60 = vrot.slane %v1216_v45, %v2815_v38 }
  0xf5   : > { %2476 = vmatmul.mubr.msk.f32.gmra.mxu0 %vm349_vm0, %v2926_v20  ;;  %2504 = vmatprep.mubr.msk.f32.mxu1 %vm349_vm0, %v2941_v26  ;;  %v1952_v61 = vrot.slane %v1936_v47, %v2813_v33  ;;  %v907_v63 = vsel %vm349_vm0, %v883_v49, 0.0  ;;  %v888_v0 = vmul.f32 %v858_v51, %v2907_v16  ;;  %v887_v1 = vmul.f32 %v858_v51, %v2941_v26 }
  0xf6   : > { %2478 = vmatprep.mubr.msk.f32.mxu0 %vm349_vm0, %v2941_v26  ;;  %v1245_v2 = vrot.slane %v1215_v52, %v2815_v38  ;;  %v910_v4 = vsel %vm349_vm0, %v884_v54, 0.0  ;;  %v1241_v5 = vrot.slane %v3016_v55, %v2815_v38  ;;  %v1556_v6 = vrot.slane %v2848_v56, %v2813_v33 }
  0xf7   : > { %2505 = vmatmul.mubr.msk.f32.gmra.mxu1 %vm349_vm0, %v2907_v16  ;;  %v1944_v9 = vcombine.high %v1936_v47, %v1936_v47  ;;  %v1265_v11 = vmul.f32 %v1233_v60, %v2926_v20  ;;  %v1264_v12 = vmul.f32 %v1233_v60, %v2912_v17  ;;  %v1974_v13 = vcombine.high %v1952_v61, %v1952_v61 }
  0xf8   : > { %1302 = vadd.xlane.f32.xlu1 %v1301_v30  ;;  %1281 = vadd.xlane.f32.xlu0 %v1280_v31  ;;  %v1929_v14 = vcombine.high %v2834_v50, %v2834_v50  ;;  %v1572_v15 = vrot.slane %v1556_v6, %v2813_v33  ;;  %v1564_v21 = vcombine.high %v1556_v6, %v1556_v6  ;;  %v922_v22 = vsel %vm349_vm0, %v888_v0, 0.0 }
  0xf9   : > { %2479 = vmatmul.mubr.msk.f32.gmra.mxu0 %vm349_vm0, %v2907_v16  ;;  %2507 = vmatprep.mubr.msk.f32.mxu1 %vm349_vm0, %v2963_v34  ;;  %v1966_v19 = vrot.slane %v1944_v9, %v2813_v33  ;;  %v919_v23 = vsel %vm349_vm0, %v887_v1, 0.0  ;;  %v1989_v24 = vrot.slane %v1974_v13, %v2815_v38  ;;  %v1269_v25 = vmul.f32 %v1241_v5, %v2977_v37 }
  0xfa   : > { %2481 = vmatprep.mubr.msk.f32.mxu0 %vm349_vm0, %v2963_v34  ;;  %v3065_v50 = vrot.slane %v1929_v14, %v2813_v33  ;;  %v3071_v27 = vrot.slane %v1572_v15, %v2815_v38  ;;  %v3075_v30 = vrot.slane %v1564_v21, %v2813_v33  ;;  %v1268_v31 = vmul.f32 %v1241_v5, %v2963_v34 }
  0xfb   : > { %2508 = vmatmul.mubr.msk.f32.gmra.mxu1 %vm349_vm0, %v2977_v37  ;;  %v1985_v29 = vrot.slane %v1966_v19, %v2815_v38  ;;  %v3081_v32 = vmul.f32 %v1989_v24, %v2888_v8  ;;  %v3084_v35 = vmul.f32 %v1989_v24, %v2883_v7  ;;  %v837_v44 = vcombine.high %v2915_v18, %v2915_v18 }
  0xfc   : > { %1287 = vadd.xlane.f32.xlu0 %v1286_v39  ;;  %902 = vadd.xlane.f32.xlu1 %v901_v42  ;;  %v1959_v39 = vrot.slane %v3065_v50, %v2813_v33  ;;  %v3090_v40 = vmul.f32 %v3071_v27, %v2823_v43  ;;  %v1594_v42 = vcombine.high %v1572_v15, %v1572_v15  ;;  %v1295_v49 = vsel %vm349_vm0, %v1265_v11, 0.0 }
  0xfd   : > { %2482 = vmatmul.mubr.msk.f32.gmra.mxu0 %vm349_vm0, %v2977_v37  ;;  %2510 = vmatprep.mubr.msk.f32.mxu1 %vm349_vm0, %v2996_v48  ;;  %v3093_v41 = vmul.f32 %v1985_v29, %v2855_v57  ;;  %v3102_v45 = vmul.f32 %v1985_v29, %v2829_v46  ;;  %v1292_v51 = vsel %vm349_vm0, %v1264_v12, 0.0  ;;  %v1271_v52 = vmul.f32 %v1245_v2, %v3010_v53 }
  0xfe   : > { %2484 = vmatprep.mubr.msk.f32.mxu0 %vm349_vm0, %v2996_v48  ;;  %v1997_v47 = vrot.slane %v1959_v39, %v2815_v38  ;;  %v1270_v54 = vmul.f32 %v1245_v2, %v2996_v48  ;;  %v1981_v18 = vrot.slane %v1952_v61, %v2815_v38  ;;  %v1609_v0 = vrot.slane %v1594_v42, %v2815_v38 }
  0xff   : > { %2511 = vmatmul.mubr.msk.f32.gmra.mxu1 %vm349_vm0, %v3010_v53  ;;  %v1549_v1 = vcombine.high %v2848_v56, %v2848_v56  ;;  %v1304_v61 = vsel %vm349_vm0, %v1268_v31, 0.0  ;;  %v854_v2 = vrot.slane %v837_v44, %v2815_v38  ;;  %v1975_v13 = vcombine.high %v1959_v39, %v1959_v39 }
 0x100   : > { %1299 = vadd.xlane.f32.xlu0 %v1298_v58  ;;  %905 = vadd.xlane.f32.xlu1 %v904_v59  ;;  %v806_v58 = vcombine.high %v2950_v28, %v2950_v28  ;;  %v3117_v59 = vmul.f32 %v1997_v47, %v2907_v16  ;;  %v3120_v60 = vmul.f32 %v1997_v47, %v2941_v26  ;;  %v1307_v28 = vsel %vm349_vm0, %v1269_v25, 0.0 }
 0x101   : > { %2485 = vmatmul.mubr.msk.f32.gmra.mxu0 %vm349_vm0, %v3010_v53  ;;  %2513 = vmatprep.mubr.msk.f32.mxu1 %vm349_vm0, %v3027_v62  ;;  %v3143_v6 = vmul.f32 %v1609_v0, %v2888_v8  ;;  %v3146_v9 = vmul.f32 %v1609_v0, %v2883_v7  ;;  %v1563_v11 = vrot.slane %v1549_v1, %v2813_v33 }
 0x102   : > { %2487 = vmatprep.mubr.msk.f32.mxu0 %vm349_vm0, %v3027_v62  ;;  %v2019_v14 = vmul.f32 %v1981_v18, %v2823_v43  ;;  %v836_v15 = vcombine.high %v2972_v36, %v2972_v36  ;;  %v3174_v36 = vrot.slane %v806_v58, %v2813_v33  ;;  %v2005_v24 = vrot.slane %v1975_v13, %v2815_v38 }
 0x103   : > { %2514 = vmatmul.mubr.msk.f32.gmra.mxu1 %vm349_vm0, %v3040_v3  ;;  %v1579_v21 = vrot.slane %v1563_v11, %v2813_v33  ;;  %v1565_v29 = vcombine.high %v1563_v11, %v1563_v11  ;;  %v885_v58 = vmul.f32 %v854_v2, %v2912_v17 }
 0x104   : > { %908 = vadd.xlane.f32.xlu0 %v907_v63  ;;  %911 = vadd.xlane.f32.xlu1 %v910_v4  ;;  %v1605_v63 = vrot.slane %v3075_v30, %v2815_v38  ;;  %v1976_v4 = vcombine.high %v1966_v19, %v1966_v19  ;;  %v1310_v19 = vsel %vm349_vm0, %v1270_v54, 0.0  ;;  %v2037_v39 = vsel %vm349_vm0, %v2019_v14, 0.0 }
 0x105   : > { %2488 = vmatmul.mubr.msk.f32.gmra.mxu0 %vm349_vm0, %v3040_v3  ;;  %2544 = vmatprep.mubr.msk.f32.mxu1 %vm349_vm0, %v2801_v10  ;;  %v1617_v25 = vrot.slane %v1579_v21, %v2815_v38  ;;  %v1595_v31 = vcombine.high %v1579_v21, %v1579_v21  ;;  %v3187_v44 = vmul.f32 %v2005_v24, %v3010_v53 }
 0x106   : > { %2518 = vmatprep.mubr.msk.f32.mxu0 %vm349_vm0, %v2801_v10  ;;  %v3137_v5 = vmul.f32 %v1605_v63, %v2855_v57  ;;  %v3140_v56 = vmul.f32 %v1605_v63, %v2829_v46  ;;  %v1993_v12 = vrot.slane %v1976_v4, %v2815_v38  ;;  %v862_v63 = vrot.slane %v3174_v36, %v2815_v38 }
 0x107   : > { %2545 = vmatmul.mubr.msk.f32.vlgmr.msra.gmra.mxu1 %vm349_vm0, %v2823_v43 }
 0x108   : > { %923 = vadd.xlane.f32.xlu1 %v922_v22  ;;  %920 = vadd.xlane.f32.xlu0 %v919_v23  ;;  %v3166_v22 = vmul.f32 %v1993_v12, %v2926_v20  ;;  %v889_v13 = vmul.f32 %v862_v63, %v2963_v34 }
 0x109   : > { %2519 = vmatmul.mubr.msk.f32.vlgmr.msra.gmra.mxu0 %vm349_vm0, %v2823_v43  ;;  %2547 = vmatprep.mubr.msk.f32.mxu1 %vm349_vm0, %v2829_v46  ;;  %v3169_v43 = vmul.f32 %v1993_v12, %v2912_v17  ;;  %v913_v12 = vsel %vm349_vm0, %v885_v58, 0.0  ;;  %v2043_v58 = vsel %vm349_vm0, %v3093_v41, 0.0  ;;  %v2061_v41 = vsel %vm349_vm0, %v3117_v59, 0.0 }
 0x10a   : > { %2521 = vmatprep.mubr.msk.f32.mxu0 %vm349_vm0, %v2829_v46  ;;  %v1313_v46 = vsel %vm349_vm0, %v1271_v52, 0.0  ;;  %v1660_v59 = vsel %vm349_vm0, %v3140_v56, 0.0 }
 0x10b   : > { %2548 = vmatmul.mubr.msk.f32.gmra.mxu1 %vm349_vm0, %v2855_v57  ;;  %v2052_v56 = vsel %vm349_vm0, %v3169_v43, 0.0 }
 0x10c   : > { %1296 = vadd.xlane.f32.xlu1 %v1295_v49  ;;  %1293 = vadd.xlane.f32.xlu0 %v1292_v51  ;;  %v3198_v49 = vmul.f32 %v1617_v25, %v2907_v16  ;;  %v3201_v51 = vmul.f32 %v1617_v25, %v2941_v26 }
 0x10d   : > { %2550 = vmatprep.mubr.msk.f32.mxu1 %vm349_vm0, %v2883_v7  ;;  %2522 = vmatmul.mubr.msk.f32.gmra.mxu0 %vm349_vm0, %v2855_v57  ;;  %v1945_v57 = vcombine.high %v3065_v50, %v3065_v50  ;;  %v886_v50 = vmul.f32 %v854_v2, %v2926_v20 }
 0x10e   : > { %2524 = vmatprep.mubr.msk.f32.mxu0 %vm349_vm0, %v2883_v7  ;;  %v2018_v7 = vmul.f32 %v1981_v18, %v2801_v10 }
 0x10f   : > { %2551 = vmatmul.mubr.msk.f32.gmra.mxu1 %vm349_vm0, %v2888_v8  ;;  %v1973_v23 = vrot.slane %v1945_v57, %v2813_v33  ;;  %v890_v57 = vmul.f32 %v862_v63, %v2977_v37  ;;  %v2040_v63 = vsel %vm349_vm0, %v3102_v45, 0.0  ;;  %v2058_v45 = vsel %vm349_vm0, %v3120_v60, 0.0 }
 0x110   : > { %1308 = vadd.xlane.f32.xlu1 %v1307_v28  ;;  %1305 = vadd.xlane.f32.xlu0 %v1304_v61  ;;  %v2034_v47 = vsel %vm349_vm0, %v2018_v7, 0.0  ;;  %v1625_v28 = vrot.slane %v1595_v31, %v2815_v38  ;;  %v916_v61 = vsel %vm349_vm0, %v886_v50, 0.0  ;;  %v1681_v60 = vsel %vm349_vm0, %v3198_v49, 0.0 }
 0x111   : > { %2553 = vmatprep.mubr.msk.f32.mxu1 %vm349_vm0, %v2912_v17  ;;  %2525 = vmatmul.mubr.msk.f32.gmra.mxu0 %vm349_vm0, %v2888_v8  ;;  %v1596_v8 = vcombine.high %v3075_v30, %v3075_v30  ;;  %v2001_v42 = vrot.slane %v1973_v23, %v2815_v38  ;;  %v3190_v30 = vmul.f32 %v2005_v24, %v2996_v48  ;;  %v928_v24 = vsel %vm349_vm0, %v890_v57, 0.0 }
 0x112   : > { %2527 = vmatprep.mubr.msk.f32.mxu0 %vm349_vm0, %v2912_v17  ;;  %v1977_v2 = vcombine.high %v1973_v23, %v1973_v23  ;;  %v3237_v4 = vmul.f32 %v1625_v28, %v3010_v53  ;;  %v3240_v11 = vmul.f32 %v1625_v28, %v2996_v48  ;;  %v2073_v49 = vsel %vm349_vm0, %v3187_v44, 0.0 }
 0x113   : > { %2554 = vmatmul.mubr.msk.f32.gmra.mxu1 %vm349_vm0, %v2926_v20  ;;  %v1613_v52 = vrot.slane %v1596_v8, %v2815_v38  ;;  %v3207_v54 = vmul.f32 %v2001_v42, %v2977_v37  ;;  %v3210_v18 = vmul.f32 %v2001_v42, %v2963_v34  ;;  %v1638_v42 = vmul.f32 %v3071_v27, %v2801_v10 }
 0x114   : > { %1314 = vadd.xlane.f32.xlu1 %v1313_v46  ;;  %1311 = vadd.xlane.f32.xlu0 %v1310_v19  ;;  %v2049_v10 = vsel %vm349_vm0, %v3081_v32, 0.0  ;;  %v2046_v27 = vsel %vm349_vm0, %v3084_v35, 0.0  ;;  %v1693_v44 = vsel %vm349_vm0, %v3237_v4, 0.0 }
 0x115   : > { %2556 = vmatprep.mubr.msk.f32.mxu1 %vm349_vm0, %v2941_v26  ;;  %2528 = vmatmul.mubr.msk.f32.gmra.mxu0 %vm349_vm0, %v2926_v20  ;;  %v3218_v0 = vmul.f32 %v1613_v52, %v2926_v20  ;;  %v3221_v1 = vmul.f32 %v1613_v52, %v2912_v17  ;;  %v866_v20 = vrot.slane %v836_v15, %v2815_v38  ;;  %v1654_v52 = vsel %vm349_vm0, %v1638_v42, 0.0 }
 0x116   : > { %2530 = vmatprep.mubr.msk.f32.mxu0 %vm349_vm0, %v2941_v26  ;;  %v1593_v26 = vrot.slane %v1565_v29, %v2813_v33  ;;  %v1217_v17 = vcombine.high %v3016_v55, %v3016_v55  ;;  %v2009_v55 = vrot.slane %v1977_v2, %v2815_v38 }
 0x117   : > { %2557 = vmatmul.mubr.msk.f32.gmra.mxu1 %vm349_vm0, %v2907_v16  ;;  %v892_v21 = vmul.f32 %v866_v20, %v3010_v53  ;;  %v891_v23 = vmul.f32 %v866_v20, %v2996_v48  ;;  %v1672_v43 = vsel %vm349_vm0, %v3221_v1, 0.0 }
 0x118   : > { %2038 = vadd.xlane.f32.xlu1 %v2037_v39  ;;  %2035 = vadd.xlane.f32.xlu0 %v2034_v47  ;;  %v1621_v33 = vrot.slane %v1593_v26, %v2815_v38  ;;  %v3260_v15 = vmul.f32 %v2009_v55, %v3040_v3  ;;  %v3263_v19 = vmul.f32 %v2009_v55, %v3027_v62  ;;  %v1657_v47 = vsel %vm349_vm0, %v3090_v40, 0.0 }
 0x119   : > { %2531 = vmatmul.mubr.msk.f32.gmra.mxu0 %vm349_vm0, %v2907_v16  ;;  %2559 = vmatprep.mubr.msk.f32.mxu1 %vm349_vm0, %v2963_v34  ;;  %v1597_v16 = vcombine.high %v1593_v26, %v1593_v26  ;;  %v931_v25 = vsel %vm349_vm0, %v891_v23, 0.0  ;;  %v838_v26 = vcombine.high %v3174_v36, %v3174_v36 }
 0x11a   : > { %2533 = vmatprep.mubr.msk.f32.mxu0 %vm349_vm0, %v2963_v34  ;;  %v3249_v46 = vmul.f32 %v1621_v33, %v2977_v37  ;;  %v3252_v14 = vmul.f32 %v1621_v33, %v2963_v34  ;;  %v1249_v34 = vrot.slane %v1217_v17, %v2815_v38  ;;  %v2079_v20 = vsel %vm349_vm0, %v3260_v15, 0.0 }
 0x11b   : > { %2560 = vmatmul.mubr.msk.f32.gmra.mxu1 %vm349_vm0, %v2977_v37  ;;  %v1629_v7 = vrot.slane %v1597_v16, %v2815_v38  ;;  %v870_v40 = vrot.slane %v838_v26, %v2815_v38  ;;  %v1663_v38 = vsel %vm349_vm0, %v3137_v5, 0.0  ;;  %v2055_v5 = vsel %vm349_vm0, %v3166_v22, 0.0 }
 0x11c   : > { %917 = vadd.xlane.f32.xlu1 %v916_v61  ;;  %914 = vadd.xlane.f32.xlu0 %v913_v12  ;;  %v1273_v29 = vmul.f32 %v1249_v34, %v3040_v3  ;;  %v1272_v31 = vmul.f32 %v1249_v34, %v3027_v62  ;;  %v1678_v61 = vsel %vm349_vm0, %v3201_v51, 0.0  ;;  %v2070_v51 = vsel %vm349_vm0, %v3190_v30, 0.0 }
 0x11d   : > { %2562 = vmatprep.mubr.msk.f32.mxu1 %vm349_vm0, %v2996_v48  ;;  %2534 = vmatmul.mubr.msk.f32.gmra.mxu0 %vm349_vm0, %v2977_v37  ;;  %v925_v37 = vsel %vm349_vm0, %v889_v13, 0.0  ;;  %v3275_v8 = vmul.f32 %v1629_v7, %v3040_v3  ;;  %v3278_v50 = vmul.f32 %v1629_v7, %v3027_v62  ;;  %v894_v36 = vmul.f32 %v870_v40, %v3040_v3 }
 0x11e   : > { %2536 = vmatprep.mubr.msk.f32.mxu0 %vm349_vm0, %v2996_v48  ;;  %v934_v48 = vsel %vm349_vm0, %v892_v21, 0.0  ;;  %v1316_v39 = vsel %vm349_vm0, %v1272_v31, 0.0  ;;  %v893_v28 = vmul.f32 %v870_v40, %v3027_v62  ;;  %v1675_v22 = vsel %vm349_vm0, %v3218_v0, 0.0 }
 0x11f   : > { %2563 = vmatmul.mubr.msk.f32.gmra.mxu1 %vm349_vm0, %v3010_v53  ;;  %v940_v32 = vsel %vm349_vm0, %v894_v36, 0.0  ;;  %v1690_v30 = vsel %vm349_vm0, %v3240_v11, 0.0  ;;  %v1699_v0 = vsel %vm349_vm0, %v3275_v8, 0.0  ;;  %v1696_v1 = vsel %vm349_vm0, %v3278_v50, 0.0 }
 0x120   : > { %929 = vadd.xlane.f32.xlu1 %v928_v24  ;;  %926 = vadd.xlane.f32.xlu0 %v925_v37  ;;  %v937_v35 = vsel %vm349_vm0, %v893_v28, 0.0  ;;  %v2076_v17 = vsel %vm349_vm0, %v3263_v19, 0.0  ;;  %v3383_v28 = vld [vmem:[%s3718_s1 + $0x8] sm:$0xff] }
 0x121   : > { %2537 = vmatmul.mubr.msk.f32.gmra.mxu0 %vm349_vm0, %v3010_v53  ;;  %2565 = vmatprep.mubr.msk.f32.mxu1 %vm349_vm0, %v3027_v62  ;;  %v1319_v53 = vsel %vm349_vm0, %v1273_v29, 0.0 }
 0x122   : > { %2539 = vmatprep.mubr.msk.f32.mxu0 %vm349_vm0, %v3027_v62  ;;  %v1666_v62 = vsel %vm349_vm0, %v3146_v9, 0.0  ;;  %v2064_v9 = vsel %vm349_vm0, %v3210_v18, 0.0  ;;  %v1684_v18 = vsel %vm349_vm0, %v3252_v14, 0.0 }
 0x123   : > { %2566 = vmatmul.mubr.msk.f32.gmra.mxu1 %vm349_vm0, %v3040_v3 }
 0x124   : > { %935 = vadd.xlane.f32.xlu1 %v934_v48  ;;  %932 = vadd.xlane.f32.xlu0 %v931_v25 }
 0x125   : > { %2540 = vmatmul.mubr.msk.f32.gmra.mxu0 %vm349_vm0, %v3040_v3  ;;  %v1669_v3 = vsel %vm349_vm0, %v3143_v6, 0.0  ;;  %v2067_v6 = vsel %vm349_vm0, %v3207_v54, 0.0  ;;  %v1687_v54 = vsel %vm349_vm0, %v3249_v46, 0.0 }
 0x128   : > { %1320 = vadd.xlane.f32.xlu1 %v1319_v53  ;;  %1317 = vadd.xlane.f32.xlu0 %v1316_v39 }
 0x12c   : > { %1658 = vadd.xlane.f32.xlu1 %v1657_v47  ;;  %1655 = vadd.xlane.f32.xlu0 %v1654_v52 }
 0x130   : > { %2044 = vadd.xlane.f32.xlu1 %v2043_v58  ;;  %2041 = vadd.xlane.f32.xlu0 %v2040_v63 }
 0x134   : > { %2050 = vadd.xlane.f32.xlu1 %v2049_v10  ;;  %2047 = vadd.xlane.f32.xlu0 %v2046_v27 }
 0x138   : > { %2062 = vadd.xlane.f32.xlu1 %v2061_v41  ;;  %2059 = vadd.xlane.f32.xlu0 %v2058_v45 }
 0x13c   : > { %941 = vadd.xlane.f32.xlu1 %v940_v32  ;;  %938 = vadd.xlane.f32.xlu0 %v937_v35 }
 0x140   : > { %1664 = vadd.xlane.f32.xlu1 %v1663_v38  ;;  %1661 = vadd.xlane.f32.xlu0 %v1660_v59  ;;  %v3389_v59 = vld [vmem:[%s3718_s1] sm:$0xff] }
 0x144   : > { %1670 = vadd.xlane.f32.xlu1 %v1669_v3  ;;  %1667 = vadd.xlane.f32.xlu0 %v1666_v62 }
 0x148   : > { %1682 = vadd.xlane.f32.xlu1 %v1681_v60  ;;  %1679 = vadd.xlane.f32.xlu0 %v1678_v61 }
 0x14c   : > { %2056 = vadd.xlane.f32.xlu1 %v2055_v5  ;;  %2053 = vadd.xlane.f32.xlu0 %v2052_v56 }
 0x150   : > { %2068 = vadd.xlane.f32.xlu1 %v2067_v6  ;;  %2065 = vadd.xlane.f32.xlu0 %v2064_v9 }
 0x154   : > { %2074 = vadd.xlane.f32.xlu1 %v2073_v49  ;;  %2071 = vadd.xlane.f32.xlu0 %v2070_v51  ;;  %v3396_v49 = vld [vmem:[%s3718_s1 + $0x18] sm:$0xff] }
 0x158   : > { %1676 = vadd.xlane.f32.xlu1 %v1675_v22  ;;  %1673 = vadd.xlane.f32.xlu0 %v1672_v43 }
 0x15c   : > { %1688 = vadd.xlane.f32.xlu1 %v1687_v54  ;;  %1685 = vadd.xlane.f32.xlu0 %v1684_v18 }
 0x160   : > { %1694 = vadd.xlane.f32.xlu1 %v1693_v44  ;;  %1691 = vadd.xlane.f32.xlu0 %v1690_v30 }
 0x164   : > { %1700 = vadd.xlane.f32.xlu1 %v1699_v0  ;;  %1697 = vadd.xlane.f32.xlu0 %v1696_v1 }
 0x168   : > { %2080 = vadd.xlane.f32.xlu1 %v2079_v20  ;;  %2077 = vadd.xlane.f32.xlu0 %v2076_v17  ;;  %v3409_v20 = vld [vmem:[%s3718_s1 + $0x10] sm:$0xff] }
 0x175   : > { %v1279_v2 = vpop.xlane.xlu1 %1278  ;;  %v1276_v33 = vpop.xlane.xlu0 %1275 }
 0x176   : > { %v1323_v48 = vadd.f32 1e-09, %v1279_v2  ;;  %v1322_v53 = vadd.f32 1e-09, %v1276_v33 }
 0x179   : > { %v1285_v4 = vpop.xlane.xlu1 %1284  ;;  %v897_v11 = vpop.xlane.xlu0 %896 }
 0x17a   : > { %v943_v25 = vadd.f32 1e-09, %v897_v11  ;;  %v1325_v42 = vadd.f32 1e-09, %v1285_v4 }
 0x17d   : > { %v1291_v16 = vpop.xlane.xlu1 %1290  ;;  %v900_v12 = vpop.xlane.xlu0 %899 }
 0x17e   : > { %v944_v50 = vadd.f32 1e-09, %v900_v12  ;;  %v1327_v10 = vadd.f32 1e-09, %v1291_v16 }
 0x180   : > { %2585 = vrcp.f32 %v944_v50 }
 0x181   : > { %v3364_v57 = vpop.xlane.xlu1 %1302  ;;  %v1282_v13 = vpop.xlane.xlu0 %1281  ;;  %2587 = vrcp.f32 %v1323_v48 }
 0x182   : > { %2589 = vrcp.f32 %v943_v25  ;;  %v1324_v63 = vadd.f32 1e-09, %v1282_v13  ;;  %v1331_v43 = vadd.f32 1e-09, %v3364_v57 }
 0x183   : > { %2591 = vrcp.f32 %v1322_v53 }
 0x185   : > { %v1288_v55 = vpop.xlane.xlu0 %1287  ;;  %v903_v46 = vpop.xlane.xlu1 %902 }
 0x186   : > { %v945_v47 = vadd.f32 1e-09, %v903_v46  ;;  %v1326_v45 = vadd.f32 1e-09, %v1288_v55 }
 0x189   : > { %v3366_v14 = vpop.xlane.xlu0 %1299  ;;  %v906_v7 = vpop.xlane.xlu1 %905 }
 0x18a   : > { %v946_v39 = vadd.f32 1e-09, %v906_v7  ;;  %v1330_v4 = vadd.f32 1e-09, %v3366_v14  ;;  %v3419_v14 = vld [vmem:[%s3718_s1 + $0x28] sm:$0xff] }
 0x18c   : > { %2593 = vrcp.f32 %v946_v39 }
 0x18d   : > { %v909_v15 = vpop.xlane.xlu0 %908  ;;  %v912_v21 = vpop.xlane.xlu1 %911  ;;  %2595 = vrcp.f32 %v1325_v42 }
 0x18e   : > { %v948_v26 = vadd.f32 1e-09, %v912_v21  ;;  %2597 = vrcp.f32 %v945_v47  ;;  %v947_v27 = vadd.f32 1e-09, %v909_v15  ;;  %v2586_v22 = vpop.eup %2585 }
 0x18f   : > { %2599 = vrcp.f32 %v1324_v63  ;;  %v2588_v44 = vpop.eup %2587 }
 0x190   : > { %2601 = vrcp.f32 %v948_v26  ;;  %v2590_v33 = vpop.eup %2589 }
 0x191   : > { %v924_v23 = vpop.xlane.xlu1 %923  ;;  %v921_v19 = vpop.xlane.xlu0 %920  ;;  %2603 = vrcp.f32 %v1327_v10 }
 0x192   : > { %2605 = vrcp.f32 %v947_v27  ;;  %v952_v6 = vadd.f32 1e-09, %v924_v23  ;;  %v951_v30 = vadd.f32 1e-09, %v921_v19  ;;  %v2592_v13 = vpop.eup %2591 }
 0x193   : > { %2607 = vrcp.f32 %v1326_v45 }
 0x195   : > { %v1297_v34 = vpop.xlane.xlu1 %1296  ;;  %v1294_v24 = vpop.xlane.xlu0 %1293 }
 0x196   : > { %v1329_v35 = vadd.f32 1e-09, %v1297_v34  ;;  %v1328_v60 = vadd.f32 1e-09, %v1294_v24 }
 0x199   : > { %v3368_v37 = vpop.xlane.xlu1 %1308  ;;  %v3370_v8 = vpop.xlane.xlu0 %1305 }
 0x19a   : > { %v2594_v21 = vpop.eup %2593  ;;  %v1333_v23 = vadd.f32 1e-09, %v3368_v37  ;;  %v3431_v37 = vld [vmem:[%s3718_s1 + $0x20] sm:$0xff]  ;;  %v1332_v63 = vadd.f32 1e-09, %v3370_v8  ;;  %v3447_v8 = vld [vmem:[%s3718_s1 + $0x38] sm:$0xff] }
 0x19b   : > { %v2596_v50 = vpop.eup %2595 }
 0x19c   : > { %v2598_v47 = vpop.eup %2597 }
 0x19d   : > { %v3372_v29 = vpop.xlane.xlu1 %1314  ;;  %v3374_v31 = vpop.xlane.xlu0 %1311 }
 0x1a1   : > { %v3376_v52 = vpop.xlane.xlu1 %2038  ;;  %v3378_v58 = vpop.xlane.xlu0 %2035 }
 0x1a5   : > { %v918_v40 = vpop.xlane.xlu1 %917  ;;  %v915_v41 = vpop.xlane.xlu0 %914 }
 0x1a6   : > { %v950_v36 = vadd.f32 1e-09, %v918_v40  ;;  %v949_v38 = vadd.f32 1e-09, %v915_v41  ;;  %v2600_v41 = vpop.eup %2599 }
 0x1a7   : > { %v2494_v32 = vpop.f32.mrf.mxu1 }
 0x1a8   : > { %v1355_v61 = vmul.f32 %v2494_v32, %v3383_v28  ;;  %2609 = vrcp.f32 %v950_v36 }
 0x1a9   : > { %v1089_v3 = vpop.f32.mrf.mxu1  ;;  %v930_v62 = vpop.xlane.xlu1 %929  ;;  %2611 = vrcp.f32 %v1329_v35 }
 0x1aa   : > { %v927_v5 = vpop.xlane.xlu0 %926  ;;  %v2468_v56 = vpop.f32.mrf.mxu0  ;;  %v1354_v54 = vmul.f32 %v1089_v3, %v3389_v59  ;;  %2613 = vrcp.f32 %v949_v38  ;;  %v1371_v11 = vmul.f32 %v2588_v44, %v1355_v61  ;;  %v954_v55 = vadd.f32 1e-09, %v930_v62 }
 0x1ab   : > { %v976_v9 = vmul.f32 %v2468_v56, %v3383_v28  ;;  %v2497_v51 = vpop.f32.mrf.mxu1  ;;  %2615 = vrcp.f32 %v1328_v60  ;;  %v953_v48 = vadd.f32 1e-09, %v927_v5  ;;  %v2602_v38 = vpop.eup %2601  ;;  %v1335_v3 = vadd.f32 1e-09, %v3372_v29  ;;  %v3459_v29 = vld [vmem:[%s3718_s1 + $0x30] sm:$0xff] }
 0x1ac   : > { %v710_v18 = vpop.f32.mrf.mxu0  ;;  %v1357_v16 = vmul.f32 %v2497_v51, %v3396_v49  ;;  %2617 = vrcp.f32 %v952_v6  ;;  %v1370_v19 = vmul.f32 %v2592_v13, %v1354_v54  ;;  %2288 = vst.msk [vmem:[%s3401_s23 + $0x88] sm:$0xff] %vm349_vm0, %v1371_v11  ;;  %v2604_v5 = vpop.eup %2603  ;;  %v1334_v54 = vadd.f32 1e-09, %v3374_v31  ;;  %v3471_v31 = vld [vmem:[%s3718_s1 + $0x48] sm:$0xff] }
 0x1ad   : > { %v992_v0 = vmul.f32 %v2586_v22, %v976_v9  ;;  %v975_v1 = vmul.f32 %v710_v18, %v3389_v59  ;;  %v1099_v17 = vpop.f32.mrf.mxu1  ;;  %v936_v2 = vpop.xlane.xlu1 %935  ;;  %2619 = vrcp.f32 %v1331_v43 }
 0x1ae   : > { %v933_v12 = vpop.xlane.xlu0 %932  ;;  %v2471_v57 = vpop.f32.mrf.mxu0  ;;  %v1356_v34 = vmul.f32 %v1099_v17, %v3409_v20  ;;  %2621 = vrcp.f32 %v951_v30  ;;  %2287 = vst.msk [vmem:[%s3401_s23 + $0x80] sm:$0xff] %vm349_vm0, %v1370_v19  ;;  %v1373_v26 = vmul.f32 %v2596_v50, %v1357_v16  ;;  %v956_v45 = vadd.f32 1e-09, %v936_v2 }
 0x1af   : > { %1008 = vst.msk [vmem:[%s3401_s23 + $0x8] sm:$0xff] %vm349_vm0, %v992_v0  ;;  %v991_v46 = vmul.f32 %v2590_v33, %v975_v1  ;;  %v978_v7 = vmul.f32 %v2471_v57, %v3396_v49  ;;  %v2500_v15 = vpop.f32.mrf.mxu1  ;;  %2623 = vrcp.f32 %v1330_v4  ;;  %v955_v56 = vadd.f32 1e-09, %v933_v12  ;;  %v2606_v43 = vpop.eup %2605 }
 0x1b0   : > { %v720_v24 = vpop.f32.mrf.mxu0  ;;  %v1359_v10 = vmul.f32 %v2500_v15, %v3419_v14  ;;  %2625 = vrcp.f32 %v954_v55  ;;  %v1372_v62 = vmul.f32 %v2600_v41, %v1356_v34  ;;  %2290 = vst.msk [vmem:[%s3401_s23 + $0x98] sm:$0xff] %vm349_vm0, %v1373_v26  ;;  %v2608_v1 = vpop.eup %2607  ;;  %v2083_v26 = vadd.f32 1e-09, %v3376_v52 }
 0x1b1   : > { %1007 = vst.msk [vmem:[%s3401_s23] sm:$0xff] %vm349_vm0, %v991_v46  ;;  %v994_v25 = vmul.f32 %v2594_v21, %v978_v7  ;;  %v977_v53 = vmul.f32 %v720_v24, %v3409_v20  ;;  %v1109_v39 = vpop.f32.mrf.mxu1  ;;  %v3433_v42 = vpop.xlane.xlu1 %1320  ;;  %2627 = vrcp.f32 %v1333_v23  ;;  %v3482_v46 = vld [vmem:[%s3718_s1 + $0x40] sm:$0xff] }
 0x1b2   : > { %v3439_v27 = vpop.xlane.xlu0 %1317  ;;  %v2474_v40 = vpop.f32.mrf.mxu0  ;;  %v1358_v60 = vmul.f32 %v1109_v39, %v3431_v37  ;;  %2629 = vrcp.f32 %v953_v48  ;;  %2289 = vst.msk [vmem:[%s3401_s23 + $0x90] sm:$0xff] %vm349_vm0, %v1372_v62  ;;  %v1375_v18 = vmul.f32 %v2604_v5, %v1359_v10  ;;  %v3497_v39 = vld [vmem:[%s3718_s1 + $0x58] sm:$0xff] }
 0x1b3   : > { %1010 = vst.msk [vmem:[%s3401_s23 + $0x18] sm:$0xff] %vm349_vm0, %v994_v25  ;;  %v993_v36 = vmul.f32 %v2598_v47, %v977_v53  ;;  %v980_v32 = vmul.f32 %v2474_v40, %v3419_v14  ;;  %v2503_v35 = vpop.f32.mrf.mxu1  ;;  %2631 = vrcp.f32 %v1332_v63 }
 0x1b4   : > { %v730_v61 = vpop.f32.mrf.mxu0  ;;  %v1361_v44 = vmul.f32 %v2503_v35, %v3447_v8  ;;  %2633 = vrcp.f32 %v956_v45  ;;  %v1374_v11 = vmul.f32 %v2608_v1, %v1358_v60  ;;  %2292 = vst.msk [vmem:[%s3401_s23 + $0xa8] sm:$0xff] %vm349_vm0, %v1375_v18  ;;  %v2082_v60 = vadd.f32 1e-09, %v3378_v58  ;;  %v3525_v58 = vld [vmem:[%s3718_s1 + $0x68] sm:$0xff] }
 0x1b5   : > { %1009 = vst.msk [vmem:[%s3401_s23 + $0x10] sm:$0xff] %vm349_vm0, %v993_v36  ;;  %v996_v6 = vmul.f32 %v2602_v38, %v980_v32  ;;  %v979_v9 = vmul.f32 %v730_v61, %v3431_v37  ;;  %v1119_v51 = vpop.f32.mrf.mxu1  ;;  %v1659_v22 = vpop.xlane.xlu1 %1658  ;;  %2635 = vrcp.f32 %v1335_v3  ;;  %v3509_v38 = vld [vmem:[%s3718_s1 + $0x50] sm:$0xff] }
 0x1b6   : > { %v1656_v30 = vpop.xlane.xlu0 %1655  ;;  %v2477_v0 = vpop.f32.mrf.mxu0  ;;  %v1360_v16 = vmul.f32 %v1119_v51, %v3459_v29  ;;  %2637 = vrcp.f32 %v955_v56  ;;  %2291 = vst.msk [vmem:[%s3401_s23 + $0xa0] sm:$0xff] %vm349_vm0, %v1374_v11  ;;  %v1703_v48 = vadd.f32 1e-09, %v1659_v22 }
 0x1b7   : > { %1012 = vst.msk [vmem:[%s3401_s23 + $0x28] sm:$0xff] %vm349_vm0, %v996_v6  ;;  %v995_v17 = vmul.f32 %v2606_v43, %v979_v9  ;;  %v982_v2 = vmul.f32 %v2477_v0, %v3447_v8  ;;  %v2506_v33 = vpop.f32.mrf.mxu1  ;;  %v2610_v4 = vpop.eup %2609  ;;  %2639 = vrcp.f32 %v1334_v54  ;;  %v1702_v36 = vadd.f32 1e-09, %v1656_v30 }
 0x1b8   : > { %v740_v12 = vpop.f32.mrf.mxu0  ;;  %v2612_v57 = vpop.eup %2611  ;;  %v1363_v19 = vmul.f32 %v2506_v33, %v3471_v31  ;;  %2641 = vrcp.f32 %v1703_v48 }
 0x1b9   : > { %1011 = vst.msk [vmem:[%s3401_s23 + $0x20] sm:$0xff] %vm349_vm0, %v995_v17  ;;  %v998_v13 = vmul.f32 %v2610_v4, %v982_v2  ;;  %v981_v55 = vmul.f32 %v740_v12, %v3459_v29  ;;  %v1129_v7 = vpop.f32.mrf.mxu1  ;;  %v3484_v15 = vpop.xlane.xlu1 %2044  ;;  %v1377_v23 = vmul.f32 %v2612_v57, %v1361_v44  ;;  %2643 = vrcp.f32 %v2083_v26  ;;  %v3536_v2 = vld [vmem:[%s3718_s1 + $0x60] sm:$0xff] }
 0x1ba   : > { %v2614_v21 = vpop.eup %2613  ;;  %v3489_v34 = vpop.xlane.xlu0 %2041  ;;  %v1362_v40 = vmul.f32 %v1129_v7, %v3482_v46  ;;  %2645 = vrcp.f32 %v1702_v36  ;;  %v1337_v7 = vadd.f32 1e-09, %v3433_v42 }
 0x1bb   : > { %v2480_v24 = vpop.f32.mrf.mxu0  ;;  %v2616_v50 = vpop.eup %2615  ;;  %1014 = vst.msk [vmem:[%s3401_s23 + $0x38] sm:$0xff] %vm349_vm0, %v998_v13  ;;  %v997_v25 = vmul.f32 %v2614_v21, %v981_v55  ;;  %2294 = vst.msk [vmem:[%s3401_s23 + $0xb8] sm:$0xff] %vm349_vm0, %v1377_v23  ;;  %2647 = vrcp.f32 %v2082_v60 }
 0x1bc   : > { %v984_v53 = vmul.f32 %v2480_v24, %v3471_v31  ;;  %v2509_v47 = vpop.f32.mrf.mxu1  ;;  %v2618_v63 = vpop.eup %2617  ;;  %v1376_v10 = vmul.f32 %v2616_v50, %v1360_v16  ;;  %2649 = vrcp.f32 %v1337_v7 }
 0x1bd   : > { %v750_v41 = vpop.f32.mrf.mxu0  ;;  %v2620_v45 = vpop.eup %2619  ;;  %1013 = vst.msk [vmem:[%s3401_s23 + $0x30] sm:$0xff] %vm349_vm0, %v997_v25  ;;  %v1365_v5 = vmul.f32 %v2509_v47, %v3497_v39 }
 0x1be   : > { %v1000_v32 = vmul.f32 %v2618_v63, %v984_v53  ;;  %v983_v35 = vmul.f32 %v750_v41, %v3482_v46  ;;  %v1139_v52 = vpop.f32.mrf.mxu1  ;;  %v3511_v3 = vpop.xlane.xlu1 %2050  ;;  %2293 = vst.msk [vmem:[%s3401_s23 + $0xb0] sm:$0xff] %vm349_vm0, %v1376_v10  ;;  %v1379_v61 = vmul.f32 %v2620_v45, %v1363_v19 }
 0x1bf   : > { %v2622_v62 = vpop.eup %2621  ;;  %v3517_v56 = vpop.xlane.xlu0 %2047  ;;  %v1364_v44 = vmul.f32 %v1139_v52, %v3509_v38  ;;  %v2085_v52 = vadd.f32 1e-09, %v3484_v15 }
 0x1c0   : > { %v2483_v6 = vpop.f32.mrf.mxu0  ;;  %v2624_v9 = vpop.eup %2623  ;;  %1016 = vst.msk [vmem:[%s3401_s23 + $0x48] sm:$0xff] %vm349_vm0, %v1000_v32  ;;  %v999_v51 = vmul.f32 %v2622_v62, %v983_v35  ;;  %2296 = vst.msk [vmem:[%s3401_s23 + $0xc8] sm:$0xff] %vm349_vm0, %v1379_v61 }
 0x1c1   : > { %v986_v22 = vmul.f32 %v2483_v6, %v3497_v39  ;;  %v2512_v43 = vpop.f32.mrf.mxu1  ;;  %v2626_v54 = vpop.eup %2625  ;;  %v1378_v18 = vmul.f32 %v2624_v9, %v1362_v40  ;;  %v1336_v40 = vadd.f32 1e-09, %v3439_v27 }
 0x1c2   : > { %v760_v30 = vpop.f32.mrf.mxu0  ;;  %v2628_v0 = vpop.eup %2627  ;;  %1015 = vst.msk [vmem:[%s3401_s23 + $0x40] sm:$0xff] %vm349_vm0, %v999_v51  ;;  %v1367_v12 = vmul.f32 %v2512_v43, %v3525_v58  ;;  %v2084_v51 = vadd.f32 1e-09, %v3489_v34 }
 0x1c3   : > { %v1002_v1 = vmul.f32 %v2626_v54, %v986_v22  ;;  %v985_v17 = vmul.f32 %v760_v30, %v3509_v38  ;;  %v1149_v33 = vpop.f32.mrf.mxu1  ;;  %v3538_v4 = vpop.xlane.xlu1 %2062  ;;  %2295 = vst.msk [vmem:[%s3401_s23 + $0xc0] sm:$0xff] %vm349_vm0, %v1378_v18  ;;  %v1381_v16 = vmul.f32 %v2628_v0, %v1365_v5  ;;  %v2087_v18 = vadd.f32 1e-09, %v3511_v3 }
 0x1c4   : > { %v2630_v11 = vpop.eup %2629  ;;  %v3543_v57 = vpop.xlane.xlu0 %2059  ;;  %v1366_v48 = vmul.f32 %v1149_v33, %v3536_v2 }
 0x1c5   : > { %v2486_v13 = vpop.f32.mrf.mxu0  ;;  %v2632_v55 = vpop.eup %2631  ;;  %1018 = vst.msk [vmem:[%s3401_s23 + $0x58] sm:$0xff] %vm349_vm0, %v1002_v1  ;;  %v1001_v21 = vmul.f32 %v2630_v11, %v985_v17  ;;  %2298 = vst.msk [vmem:[%s3401_s23 + $0xd8] sm:$0xff] %vm349_vm0, %v1381_v16 }
 0x1c6   : > { %v988_v23 = vmul.f32 %v2486_v13, %v3525_v58  ;;  %v3549_v19 = vpop.f32.mrf.mxu1  ;;  %v2634_v24 = vpop.eup %2633  ;;  %v1380_v50 = vmul.f32 %v2632_v55, %v1364_v44 }
 0x1c7   : > { %v770_v25 = vpop.f32.mrf.mxu0  ;;  %v2636_v53 = vpop.eup %2635  ;;  %1017 = vst.msk [vmem:[%s3401_s23 + $0x50] sm:$0xff] %vm349_vm0, %v1001_v21 }
 0x1c8   : > { %v1004_v42 = vmul.f32 %v2634_v24, %v988_v23  ;;  %v987_v47 = vmul.f32 %v770_v25, %v3536_v2  ;;  %v3557_v63 = vpop.f32.mrf.mxu1  ;;  %v942_v26 = vpop.xlane.xlu1 %941  ;;  %2297 = vst.msk [vmem:[%s3401_s23 + $0xd0] sm:$0xff] %vm349_vm0, %v1380_v50  ;;  %v1383_v41 = vmul.f32 %v2636_v53, %v1367_v12  ;;  %v2091_v50 = vadd.f32 1e-09, %v3538_v4  ;;  %v3588_v53 = vld [vmem:[%s3718_s1 + $0x78] sm:$0xff]  ;;  %v3595_v4 = vld [vmem:[%s3718_s1 + $0x70] sm:$0xff] }
 0x1c9   : > { %v2638_v10 = vpop.eup %2637  ;;  %v958_v45 = vadd.f32 1e-09, %v942_v26  ;;  %v939_v36 = vpop.xlane.xlu0 %938 }
 0x1ca   : > { %v3562_v32 = vpop.f32.mrf.mxu0  ;;  %v2640_v35 = vpop.eup %2639  ;;  %1020 = vst.msk [vmem:[%s3401_s23 + $0x68] sm:$0xff] %vm349_vm0, %v1004_v42  ;;  %v1003_v62 = vmul.f32 %v2638_v10, %v987_v47  ;;  %v957_v60 = vadd.f32 1e-09, %v939_v36  ;;  %2300 = vst.msk [vmem:[%s3401_s23 + $0xe8] sm:$0xff] %vm349_vm0, %v1383_v41  ;;  %v2090_v10 = vadd.f32 1e-09, %v3543_v57  ;;  %v1368_v57 = vmul.f32 %v3557_v63, %v3595_v4 }
 0x1cb   : > { %v2546_v61 = vpop.f32.mrf.mxu1  ;;  %v1382_v5 = vmul.f32 %v2640_v35, %v1366_v48  ;;  %2651 = vrcp.f32 %v958_v45  ;;  %v2642_v1 = vpop.eup %2641  ;;  %v1369_v35 = vmul.f32 %v3549_v19, %v3588_v53 }
 0x1cc   : > { %v780_v27 = vpop.f32.mrf.mxu0  ;;  %1019 = vst.msk [vmem:[%s3401_s23 + $0x60] sm:$0xff] %vm349_vm0, %v1003_v62  ;;  %2653 = vrcp.f32 %v957_v60  ;;  %v1665_v9 = vpop.xlane.xlu1 %1664  ;;  %v2115_v15 = vmul.f32 %v2546_v61, %v3383_v28 }
 0x1cd   : > { %v1849_v6 = vpop.f32.mrf.mxu1  ;;  %2655 = vrcp.f32 %v1336_v40  ;;  %2299 = vst.msk [vmem:[%s3401_s23 + $0xe0] sm:$0xff] %vm349_vm0, %v1382_v5  ;;  %v1705_v22 = vadd.f32 1e-09, %v1665_v9  ;;  %v1662_v43 = vpop.xlane.xlu0 %1661  ;;  %v990_v40 = vmul.f32 %v3562_v32, %v3588_v53 }
 0x1ce   : > { %v2520_v54 = vpop.f32.mrf.mxu0  ;;  %2657 = vrcp.f32 %v2085_v52  ;;  %v1704_v44 = vadd.f32 1e-09, %v1662_v43  ;;  %v2114_v17 = vmul.f32 %v1849_v6, %v3389_v59  ;;  %v2644_v33 = vpop.eup %2643  ;;  %v989_v52 = vmul.f32 %v780_v27, %v3595_v4 }
 0x1cf   : > { %v1735_v30 = vmul.f32 %v2520_v54, %v3383_v28  ;;  %v3577_v0 = vpop.f32.mrf.mxu1  ;;  %2659 = vrcp.f32 %v1705_v22  ;;  %v2646_v55 = vpop.eup %2645  ;;  %v2086_v28 = vadd.f32 1e-09, %v3517_v56  ;;  %v2131_v3 = vmul.f32 %v2644_v33, %v2115_v15 }
 0x1d0   : > { %v1469_v34 = vpop.f32.mrf.mxu0  ;;  %2661 = vrcp.f32 %v1704_v44  ;;  %v1671_v13 = vpop.xlane.xlu1 %1670 }
 0x1d1   : > { %v1751_v11 = vmul.f32 %v2642_v1, %v1735_v30  ;;  %v1734_v16 = vmul.f32 %v1469_v34, %v3389_v59  ;;  %v1859_v12 = vpop.f32.mrf.mxu1  ;;  %2663 = vrcp.f32 %v2084_v51  ;;  %v1707_v7 = vadd.f32 1e-09, %v1671_v13  ;;  %v1668_v21 = vpop.xlane.xlu0 %1667  ;;  %2352 = vst.msk [vmem:[%s3401_s23 + $0x188] sm:$0xff] %vm349_vm0, %v2131_v3 }
 0x1d2   : > { %v2523_v23 = vpop.f32.mrf.mxu0  ;;  %v2648_v24 = vpop.eup %2647  ;;  %2665 = vrcp.f32 %v2087_v18  ;;  %v1706_v59 = vadd.f32 1e-09, %v1668_v21  ;;  %v2117_v18 = vmul.f32 %v3577_v0, %v3396_v49 }
 0x1d3   : > { %2320 = vst.msk [vmem:[%s3401_s23 + $0x108] sm:$0xff] %vm349_vm0, %v1751_v11  ;;  %v1750_v48 = vmul.f32 %v2646_v55, %v1734_v16  ;;  %v2552_v25 = vpop.f32.mrf.mxu1  ;;  %v2130_v56 = vmul.f32 %v2648_v24, %v2114_v17  ;;  %2667 = vrcp.f32 %v1707_v7  ;;  %v2650_v61 = vpop.eup %2649  ;;  %v1737_v27 = vmul.f32 %v2523_v23, %v3396_v49 }
 0x1d4   : > { %v1479_v42 = vpop.f32.mrf.mxu0  ;;  %2669 = vrcp.f32 %v1706_v59  ;;  %v1683_v26 = vpop.xlane.xlu1 %1682  ;;  %v1385_v63 = vmul.f32 %v2650_v61, %v1369_v35  ;;  %v2116_v17 = vmul.f32 %v1859_v12, %v3409_v20  ;;  %v2119_v3 = vmul.f32 %v2552_v25, %v3419_v14 }
 0x1d5   : > { %2319 = vst.msk [vmem:[%s3401_s23 + $0x100] sm:$0xff] %vm349_vm0, %v1750_v48  ;;  %v1869_v47 = vpop.f32.mrf.mxu1  ;;  %2671 = vrcp.f32 %v2086_v28  ;;  %2351 = vst.msk [vmem:[%s3401_s23 + $0x180] sm:$0xff] %vm349_vm0, %v2130_v56  ;;  %v1711_v41 = vadd.f32 1e-09, %v1683_v26  ;;  %v1680_v45 = vpop.xlane.xlu0 %1679  ;;  %v1736_v44 = vmul.f32 %v1479_v42, %v3409_v20 }
 0x1d6   : > { %v2526_v36 = vpop.f32.mrf.mxu0  ;;  %2673 = vrcp.f32 %v2091_v50  ;;  %v1710_v62 = vadd.f32 1e-09, %v1680_v45  ;;  %2302 = vst.msk [vmem:[%s3401_s23 + $0xf8] sm:$0xff] %vm349_vm0, %v1385_v63  ;;  %v2118_v50 = vmul.f32 %v1869_v47, %v3431_v37 }
 0x1d7   : > { %v3607_v60 = vpop.f32.mrf.mxu1  ;;  %2675 = vrcp.f32 %v1711_v41  ;;  %v1739_v0 = vmul.f32 %v2526_v36, %v3419_v14 }
 0x1d8   : > { %v1489_v32 = vpop.f32.mrf.mxu0  ;;  %v2652_v5 = vpop.eup %2651  ;;  %2677 = vrcp.f32 %v1710_v62 }
 0x1d9   : > { %v3611_v6 = vpop.f32.mrf.mxu1  ;;  %v2057_v9 = vpop.xlane.xlu1 %2056  ;;  %2679 = vrcp.f32 %v2090_v10  ;;  %v1006_v19 = vmul.f32 %v2652_v5, %v990_v40  ;;  %v1738_v21 = vmul.f32 %v1489_v32, %v3431_v37 }
 0x1da   : > { %v2654_v51 = vpop.eup %2653  ;;  %v2054_v15 = vpop.xlane.xlu0 %2053  ;;  %v2089_v56 = vadd.f32 1e-09, %v2057_v9 }
 0x1db   : > { %v3614_v22 = vpop.f32.mrf.mxu0  ;;  %v2656_v43 = vpop.eup %2655  ;;  %v1005_v54 = vmul.f32 %v2654_v51, %v989_v52  ;;  %1022 = vst.msk [vmem:[%s3401_s23 + $0x78] sm:$0xff] %vm349_vm0, %v1006_v19  ;;  %v2088_v25 = vadd.f32 1e-09, %v2054_v15 }
 0x1dc   : > { %v2658_v30 = vpop.eup %2657  ;;  %v1384_v1 = vmul.f32 %v2656_v43, %v1368_v57  ;;  %v2558_v11 = vpop.f32.mrf.mxu1  ;;  %2681 = vrcp.f32 %v2089_v56  ;;  %v1741_v56 = vmul.f32 %v3614_v22, %v3447_v8 }
 0x1dd   : > { %v3622_v34 = vpop.f32.mrf.mxu0  ;;  %v2660_v33 = vpop.eup %2659  ;;  %1021 = vst.msk [vmem:[%s3401_s23 + $0x70] sm:$0xff] %vm349_vm0, %v1005_v54  ;;  %v2133_v28 = vmul.f32 %v2658_v30, %v2117_v18  ;;  %v2123_v36 = vmul.f32 %v2558_v11, %v3471_v31  ;;  %2683 = vrcp.f32 %v2088_v25 }
 0x1de   : > { %v2069_v16 = vpop.xlane.xlu1 %2068  ;;  %v2662_v13 = vpop.eup %2661  ;;  %2301 = vst.msk [vmem:[%s3401_s23 + $0xf0] sm:$0xff] %vm349_vm0, %v1384_v1  ;;  %v1753_v49 = vmul.f32 %v2660_v33, %v1737_v27 }
 0x1df   : > { %v2066_v55 = vpop.xlane.xlu0 %2065  ;;  %v2532_v20 = vpop.f32.mrf.mxu0  ;;  %v1752_v7 = vmul.f32 %v2662_v13, %v1736_v44  ;;  %2354 = vst.msk [vmem:[%s3401_s23 + $0x198] sm:$0xff] %vm349_vm0, %v2133_v28 }
 0x1e0   : > { %v2664_v12 = vpop.eup %2663  ;;  %2322 = vst.msk [vmem:[%s3401_s23 + $0x118] sm:$0xff] %vm349_vm0, %v1753_v49  ;;  %v1889_v42 = vpop.f32.mrf.mxu1  ;;  %v1743_v47 = vmul.f32 %v2532_v20, %v3471_v31  ;;  %v2093_v31 = vadd.f32 1e-09, %v2069_v16  ;;  %v2092_v15 = vadd.f32 1e-09, %v2066_v55 }
 0x1e1   : > { %v2666_v23 = vpop.eup %2665  ;;  %v2132_v24 = vmul.f32 %v2664_v12, %v2116_v17  ;;  %v1509_v48 = vpop.f32.mrf.mxu0  ;;  %2321 = vst.msk [vmem:[%s3401_s23 + $0x110] sm:$0xff] %vm349_vm0, %v1752_v7  ;;  %v2122_v61 = vmul.f32 %v1889_v42, %v3482_v46 }
 0x1e2   : > { %v2668_v59 = vpop.eup %2667  ;;  %v2075_v26 = vpop.xlane.xlu1 %2074  ;;  %v2135_v41 = vmul.f32 %v2666_v23, %v2119_v3  ;;  %v1742_v35 = vmul.f32 %v1509_v48, %v3482_v46 }
 0x1e3   : > { %v2670_v14 = vpop.eup %2669  ;;  %2353 = vst.msk [vmem:[%s3401_s23 + $0x190] sm:$0xff] %vm349_vm0, %v2132_v24  ;;  %v1755_v10 = vmul.f32 %v2668_v59, %v1739_v0  ;;  %v2072_v37 = vpop.xlane.xlu0 %2071  ;;  %v2095_v30 = vadd.f32 1e-09, %v2075_v26  ;;  %v2120_v59 = vmul.f32 %v3611_v6, %v3459_v29 }
 0x1e4   : > { %v2672_v40 = vpop.eup %2671  ;;  %v1754_v45 = vmul.f32 %v2670_v14, %v1738_v21  ;;  %2356 = vst.msk [vmem:[%s3401_s23 + $0x1a8] sm:$0xff] %vm349_vm0, %v2135_v41  ;;  %v2535_v18 = vpop.f32.mrf.mxu0  ;;  %v2094_v33 = vadd.f32 1e-09, %v2072_v37  ;;  %v1740_v14 = vmul.f32 %v3622_v34, %v3459_v29 }
 0x1e5   : > { %v2674_v52 = vpop.eup %2673  ;;  %v2134_v62 = vmul.f32 %v2672_v40, %v2118_v50  ;;  %2324 = vst.msk [vmem:[%s3401_s23 + $0x128] sm:$0xff] %vm349_vm0, %v1755_v10  ;;  %v2561_v13 = vpop.f32.mrf.mxu1  ;;  %v2121_v50 = vmul.f32 %v3607_v60, %v3447_v8  ;;  %v1745_v8 = vmul.f32 %v2535_v18, %v3497_v39 }
 0x1e6   : > { %v2676_v57 = vpop.eup %2675  ;;  %2323 = vst.msk [vmem:[%s3401_s23 + $0x120] sm:$0xff] %vm349_vm0, %v1754_v45  ;;  %v1677_v32 = vpop.xlane.xlu1 %1676  ;;  %v2139_v27 = vmul.f32 %v2674_v52, %v2123_v36  ;;  %v2125_v60 = vmul.f32 %v2561_v13, %v3497_v39 }
 0x1e7   : > { %v2678_v5 = vpop.eup %2677  ;;  %2355 = vst.msk [vmem:[%s3401_s23 + $0x1a0] sm:$0xff] %vm349_vm0, %v2134_v62  ;;  %v1759_v9 = vmul.f32 %v2676_v57, %v1743_v47  ;;  %v1709_v51 = vadd.f32 1e-09, %v1677_v32  ;;  %v1674_v19 = vpop.xlane.xlu0 %1673 }
 0x1e8   : > { %v2680_v46 = vpop.eup %2679  ;;  %v1758_v43 = vmul.f32 %v2678_v5, %v1742_v35  ;;  %v1708_v63 = vadd.f32 1e-09, %v1674_v19  ;;  %2360 = vst.msk [vmem:[%s3401_s23 + $0x1c8] sm:$0xff] %vm349_vm0, %v2139_v27  ;;  %v1519_v16 = vpop.f32.mrf.mxu0 }
 0x1e9   : > { %v2138_v54 = vmul.f32 %v2680_v46, %v2122_v61  ;;  %2328 = vst.msk [vmem:[%s3401_s23 + $0x148] sm:$0xff] %vm349_vm0, %v1759_v9  ;;  %2685 = vrcp.f32 %v1709_v51  ;;  %v1899_v28 = vpop.f32.mrf.mxu1  ;;  %v2682_v7 = vpop.eup %2681  ;;  %v1744_v29 = vmul.f32 %v1519_v16, %v3509_v38 }
 0x1ea   : > { %2327 = vst.msk [vmem:[%s3401_s23 + $0x140] sm:$0xff] %vm349_vm0, %v1758_v43  ;;  %2687 = vrcp.f32 %v1708_v63  ;;  %v1689_v44 = vpop.xlane.xlu1 %1688  ;;  %v2538_v12 = vpop.f32.mrf.mxu0  ;;  %v2137_v41 = vmul.f32 %v2682_v7, %v2121_v50  ;;  %v2124_v52 = vmul.f32 %v1899_v28, %v3509_v38 }
 0x1eb   : > { %2689 = vrcp.f32 %v2093_v31  ;;  %2359 = vst.msk [vmem:[%s3401_s23 + $0x1c0] sm:$0xff] %vm349_vm0, %v2138_v54  ;;  %v1713_v1 = vadd.f32 1e-09, %v1689_v44  ;;  %v1686_v17 = vpop.xlane.xlu0 %1685  ;;  %v2684_v24 = vpop.eup %2683  ;;  %v1747_v5 = vmul.f32 %v2538_v12, %v3525_v58 }
 0x1ec   : > { %2691 = vrcp.f32 %v2092_v15  ;;  %v1712_v11 = vadd.f32 1e-09, %v1686_v17  ;;  %v1529_v42 = vpop.f32.mrf.mxu0  ;;  %v2564_v25 = vpop.f32.mrf.mxu1  ;;  %v2136_v35 = vmul.f32 %v2684_v24, %v2120_v59  ;;  %2358 = vst.msk [vmem:[%s3401_s23 + $0x1b8] sm:$0xff] %vm349_vm0, %v2137_v41 }
 0x1ed   : > { %2693 = vrcp.f32 %v1713_v1  ;;  %v2127_v9 = vmul.f32 %v2564_v25, %v3525_v58  ;;  %v1746_v19 = vmul.f32 %v1529_v42, %v3536_v2 }
 0x1ee   : > { %2695 = vrcp.f32 %v1712_v11  ;;  %v1695_v49 = vpop.xlane.xlu1 %1694  ;;  %v2541_v62 = vpop.f32.mrf.mxu0  ;;  %2357 = vst.msk [vmem:[%s3401_s23 + $0x1b0] sm:$0xff] %vm349_vm0, %v2136_v35 }
 0x1ef   : > { %2697 = vrcp.f32 %v2095_v30  ;;  %v1715_v0 = vadd.f32 1e-09, %v1695_v49  ;;  %v1692_v55 = vpop.xlane.xlu0 %1691  ;;  %v1909_v39 = vpop.f32.mrf.mxu1  ;;  %v1749_v18 = vmul.f32 %v2541_v62, %v3588_v53 }
 0x1f0   : > { %2699 = vrcp.f32 %v2094_v33  ;;  %v1714_v20 = vadd.f32 1e-09, %v1692_v55  ;;  %v2126_v15 = vmul.f32 %v1909_v39, %v3536_v2  ;;  %v1539_v43 = vpop.f32.mrf.mxu0 }
 0x1f1   : > { %2701 = vrcp.f32 %v1715_v0  ;;  %v2567_v44 = vpop.f32.mrf.mxu1  ;;  %v1748_v1 = vmul.f32 %v1539_v43, %v3595_v4 }
 0x1f2   : > { %2703 = vrcp.f32 %v1714_v20  ;;  %v1701_v3 = vpop.xlane.xlu1 %1700  ;;  %v2129_v0 = vmul.f32 %v2567_v44, %v3588_v53 }
 0x1f3   : > { %v1717_v21 = vadd.f32 1e-09, %v1701_v3  ;;  %v1698_v23 = vpop.xlane.xlu0 %1697  ;;  %v1919_v13 = vpop.f32.mrf.mxu1 }
 0x1f4   : > { %v1716_v48 = vadd.f32 1e-09, %v1698_v23  ;;  %v2128_v20 = vmul.f32 %v1919_v13, %v3595_v4 }
 0x1f5   : > { %2705 = vrcp.f32 %v1717_v21 }
 0x1f6   : > { %v2686_v26 = vpop.eup %2685  ;;  %2707 = vrcp.f32 %v1716_v48  ;;  %v2081_v10 = vpop.xlane.xlu1 %2080 }
 0x1f7   : > { %v2688_v37 = vpop.eup %2687  ;;  %v1757_v47 = vmul.f32 %v2686_v26, %v1741_v56  ;;  %v2097_v40 = vadd.f32 1e-09, %v2081_v10  ;;  %v2078_v6 = vpop.xlane.xlu0 %2077 }
 0x1f8   : > { %v2690_v22 = vpop.eup %2689  ;;  %v1756_v45 = vmul.f32 %v2688_v37, %v1740_v14  ;;  %v2096_v36 = vadd.f32 1e-09, %v2078_v6 }
 0x1f9   : > { %v2692_v34 = vpop.eup %2691  ;;  %2326 = vst.msk [vmem:[%s3401_s23 + $0x138] sm:$0xff] %vm349_vm0, %v1757_v47  ;;  %2709 = vrcp.f32 %v2097_v40  ;;  %v2141_v31 = vmul.f32 %v2690_v22, %v2125_v60 }
 0x1fa   : > { %v2694_v61 = vpop.eup %2693  ;;  %2325 = vst.msk [vmem:[%s3401_s23 + $0x130] sm:$0xff] %vm349_vm0, %v1756_v45  ;;  %2711 = vrcp.f32 %v2096_v36  ;;  %v2140_v27 = vmul.f32 %v2692_v34, %v2124_v52 }
 0x1fb   : > { %v2696_v57 = vpop.eup %2695  ;;  %v1761_v32 = vmul.f32 %v2694_v61, %v1745_v8  ;;  %2362 = vst.msk [vmem:[%s3401_s23 + $0x1d8] sm:$0xff] %vm349_vm0, %v2141_v31 }
 0x1fc   : > { %v2698_v38 = vpop.eup %2697  ;;  %v1760_v51 = vmul.f32 %v2696_v57, %v1744_v29  ;;  %2361 = vst.msk [vmem:[%s3401_s23 + $0x1d0] sm:$0xff] %vm349_vm0, %v2140_v27 }
 0x1fd   : > { %v2700_v46 = vpop.eup %2699  ;;  %2330 = vst.msk [vmem:[%s3401_s23 + $0x158] sm:$0xff] %vm349_vm0, %v1761_v32  ;;  %v2143_v2 = vmul.f32 %v2698_v38, %v2127_v9 }
 0x1fe   : > { %v2702_v63 = vpop.eup %2701  ;;  %2329 = vst.msk [vmem:[%s3401_s23 + $0x150] sm:$0xff] %vm349_vm0, %v1760_v51  ;;  %v2142_v17 = vmul.f32 %v2700_v46, %v2126_v15 }
 0x1ff   : > { %v2704_v58 = vpop.eup %2703  ;;  %v1763_v54 = vmul.f32 %v2702_v63, %v1747_v5  ;;  %2364 = vst.msk [vmem:[%s3401_s23 + $0x1e8] sm:$0xff] %vm349_vm0, %v2143_v2 }
 0x200   : > { %v1762_v30 = vmul.f32 %v2704_v58, %v1746_v19  ;;  %2363 = vst.msk [vmem:[%s3401_s23 + $0x1e0] sm:$0xff] %vm349_vm0, %v2142_v17 }
 0x201   : > { %2332 = vst.msk [vmem:[%s3401_s23 + $0x168] sm:$0xff] %vm349_vm0, %v1763_v54 }
 0x202   : > { %v2706_v33 = vpop.eup %2705  ;;  %2331 = vst.msk [vmem:[%s3401_s23 + $0x160] sm:$0xff] %vm349_vm0, %v1762_v30 }
 0x203   : > { %v2708_v11 = vpop.eup %2707  ;;  %v1765_v16 = vmul.f32 %v2706_v33, %v1749_v18 }
 0x204   : > { %v1764_v49 = vmul.f32 %v2708_v11, %v1748_v1 }
 0x205   : > { %2334 = vst.msk [vmem:[%s3401_s23 + $0x178] sm:$0xff] %vm349_vm0, %v1765_v16 }
 0x206   : > { %v2710_v55 = vpop.eup %2709  ;;  %2333 = vst.msk [vmem:[%s3401_s23 + $0x170] sm:$0xff] %vm349_vm0, %v1764_v49 }
 0x207   : > { %v2712_v12 = vpop.eup %2711  ;;  %v2145_v28 = vmul.f32 %v2710_v55, %v2129_v0 }
 0x208   : > { %v2144_v3 = vmul.f32 %v2712_v12, %v2128_v20 }
 0x209   : > { %2366 = vst.msk [vmem:[%s3401_s23 + $0x1f8] sm:$0xff] %vm349_vm0, %v2145_v28 }
 0x20a   : > { %2365 = vst.msk [vmem:[%s3401_s23 + $0x1f0] sm:$0xff] %vm349_vm0, %v2144_v3 }
 0x20b PF: > { %s18_s27 = sadd.s32 1, %s2719_s27  }
 0x20c   : > { %p15_p4 = scmp.ge.s32.totalorder %s18_s27, 4  }
 0x20e   :  { %17 = sbr.rel (!%p15_p4) target bundleno = 1 (0x1), region = 88 }

</bundles_post_ra>
